<compile_context>
chip_gen: v7x
topology: tpu7x:2x2x1
jax: 0.10.0
libtpu: 0.0.40
codegen_flags: <defaults>
</compile_context>

<pallas_src>
import functools

import numpy as np
import jax
import jax.numpy as jnp
from jax.experimental import pallas as pl
from jax.experimental.pallas import tpu as pltpu

H = W = 16                  # spatial size
HW = H * W
C_IN, C_MID, C_OUT = 3, 16, 3
K = 3                       # kernel size, padding=1 -> "same"
NEG_SLOPE = 0.1             # LeakyReLU slope
LANE_PAD = 128              # spare lanes on each side of the hidden staging
                            # buffer so shifted reads (|shift| <= W+1) stay
                            # in bounds and the unshifted read stays aligned


def _net_kernel(p1_ref, w1_ref, b1_ref, w2_ref, b2_ref, m_ref, o_ref, h_ref,
                *, L, pad):
    """Fused conv1 -> LeakyReLU -> conv2 for one block of NB batch images.

    p1_ref : (1, 27, L + 2*pad)  conv1 im2col patches (features x pixels),
                                 pixels laid out on lanes; `pad` spare lanes
                                 on each side (values there are never used
                                 unmasked).
    w1_ref : (16, 27)            conv1 weights, matmul form (out_ch x feature)
    b1_ref : (16, 1)             conv1 bias (broadcast over lanes)
    w2_ref : (3, 144)            conv2 weights, matmul form
    b2_ref : (3, 1)              conv2 bias
    m_ref  : (9, 1, L)           per-tap validity masks (zero out neighbours
                                 that fall in the zero-pad ring or in a
                                 different image of the block)
    o_ref  : (1, 3, L)           output block, lane-dense (L = NB*H*W)
    h_ref  : VMEM (16, L+2*pad)  staging buffer for the hidden activation
                                 (written once, densely; read with static
                                 lane offsets to build the conv2 im2col)
    """
    # ---- conv1: a single MXU dot over the im2col features (K=27)
    h = jnp.dot(w1_ref[...], p1_ref[0], preferred_element_type=jnp.float32)
    h = h + b1_ref[...]                               # (16, L+2*pad)
    # ---- LeakyReLU(0.1)
    h = jnp.where(h > 0, h, NEG_SLOPE * h)
    # Stage the hidden once (single dense, aligned store -- no zero fill, no
    # masked offset writes) so the 9 shifted conv2 patches are plain loads.
    h_ref[...] = h

    # ---- conv2 im2col: 9 static lane-offset reads, masked, stacked to (144, L)
    taps = []
    t = 0
    for dy in (-1, 0, 1):
        for dx in (-1, 0, 1):
            shift = dy * W + dx                       # neighbour offset in the
            hs = h_ref[:, pl.ds(pad + shift, L)]      # flattened pixel axis
            taps.append(hs * m_ref[t])                # zero invalid neighbours
            t += 1
    p2 = jnp.concatenate(taps, axis=0)                # (144, L)

    # ---- conv2: a single MXU dot over the im2col features (K=144)
    out = jnp.dot(w2_ref[...], p2, preferred_element_type=jnp.float32)
    o_ref[0] = (out + b2_ref[...]).astype(o_ref.dtype)


def net_forward(x_nchw, w1_oihw, b1, w2_oihw, b2, *, batch_block=8):
    """x_nchw: (N, 3, H, W) f32; weights in PyTorch OIHW layout.

    Returns (N, 3, H, W) f32 (NCHW, like the PyTorch module).
    """
    N = x_nchw.shape[0]
    NB = min(N, batch_block)              # batch elements per grid step
    nblk = -(-N // NB)
    Npad = nblk * NB
    L = NB * HW                            # lanes per block (multiple of 128)

    # NCHW -> NHWC, pad batch to a multiple of NB, pad spatial by 1 (conv1).
    x = jnp.transpose(x_nchw, (0, 2, 3, 1)).astype(jnp.float32)
    if Npad != N:
        x = jnp.pad(x, ((0, Npad - N), (0, 0), (0, 0), (0, 0)))
    x_pad = jnp.pad(x, ((0, 0), (1, 1), (1, 1), (0, 0)))     # (Npad,H+2,W+2,3)

    # conv1 im2col, transposed (features on rows, pixels on lanes), per block,
    # with LANE_PAD spare lane columns on each side.
    taps = [x_pad[:, kh:kh + H, kw:kw + W, :]
            for kh in range(K) for kw in range(K)]
    p1 = jnp.stack(taps, axis=3).reshape(Npad, HW, K * K * C_IN)
    p1 = p1.reshape(nblk, L, K * K * C_IN)
    p1 = jnp.transpose(p1, (0, 2, 1))                         # (nblk, 27, L)
    p1 = jnp.pad(p1, ((0, 0), (0, 0), (LANE_PAD, LANE_PAD)))  # (nblk,27,L+2P)

    # Weights in matmul form (OIHW -> HWIO -> flattened feature axis).
    w1t = jnp.transpose(w1_oihw, (2, 3, 1, 0)).reshape(K * K * C_IN, C_MID).T
    w2t = jnp.transpose(w2_oihw, (2, 3, 1, 0)).reshape(K * K * C_MID, C_OUT).T
    b1c = b1.reshape(C_MID, 1).astype(jnp.float32)
    b2c = b2.reshape(C_OUT, 1).astype(jnp.float32)

    # Validity masks for the 9 conv2 taps (static, built with numpy).
    pix = np.arange(L) % HW
    yy, xx = pix // W, pix % W
    m = []
    for dy in (-1, 0, 1):
        for dx in (-1, 0, 1):
            valid = ((yy + dy >= 0) & (yy + dy < H) &
                     (xx + dx >= 0) & (xx + dx < W))
            m.append(valid.astype(np.float32))
    masks = jnp.asarray(np.stack(m)[:, None, :])              # (9, 1, L)

    kernel = functools.partial(_net_kernel, L=L, pad=LANE_PAD)

    out = pl.pallas_call(
        kernel,
        out_shape=jax.ShapeDtypeStruct((nblk, C_OUT, L), jnp.float32),
        grid_spec=pltpu.PrefetchScalarGridSpec(
            num_scalar_prefetch=0,
            grid=(nblk,),
            in_specs=[
                pl.BlockSpec((1, K * K * C_IN, L + 2 * LANE_PAD),
                             lambda n: (n, 0, 0)),
                pl.BlockSpec((C_MID, K * K * C_IN), lambda n: (0, 0)),
                pl.BlockSpec((C_MID, 1), lambda n: (0, 0)),
                pl.BlockSpec((C_OUT, K * K * C_MID), lambda n: (0, 0)),
                pl.BlockSpec((C_OUT, 1), lambda n: (0, 0)),
                pl.BlockSpec((K * K, 1, L), lambda n: (0, 0, 0)),
            ],
            out_specs=pl.BlockSpec((1, C_OUT, L), lambda n: (n, 0, 0)),
            scratch_shapes=[
                pltpu.VMEM((C_MID, L + 2 * LANE_PAD), jnp.float32),
            ],
        ),
        compiler_params=pltpu.CompilerParams(
            dimension_semantics=("parallel",)),   # batch axis -> both TCs on v7x
    )(p1, w1t, b1c, w2t, b2c, masks)

    # (nblk, 3, NB*H*W) -> (N, 3, H, W)  (NCHW, matching the PyTorch module)
    out = out.reshape(nblk, C_OUT, NB, H, W)
    out = jnp.transpose(out, (0, 2, 1, 3, 4)).reshape(Npad, C_OUT, H, W)
    return out[:N]


def reference_forward(x_nchw, w1_oihw, b1, w2_oihw, b2):
    """Pure-JAX reference (lax conv, NCHW/OIHW) for validation."""
    dn = ("NCHW", "OIHW", "NCHW")
    h = jax.lax.conv_general_dilated(
        x_nchw, w1_oihw, (1, 1), "SAME",
        dimension_numbers=jax.lax.conv_dimension_numbers(
            x_nchw.shape, w1_oihw.shape, dn))
    h = h + b1.reshape(1, C_MID, 1, 1)
    h = jnp.where(h > 0, h, NEG_SLOPE * h)
    o = jax.lax.conv_general_dilated(
        h, w2_oihw, (1, 1), "SAME",
        dimension_numbers=jax.lax.conv_dimension_numbers(
            h.shape, w2_oihw.shape, dn))
    return o + b2.reshape(1, C_OUT, 1, 1)


if __name__ == "__main__":
    key = jax.random.PRNGKey(0)
    kx, kw1, kb1, kw2, kb2 = jax.random.split(key, 5)

    N = 2
    # PyTorch conventions: input NCHW, conv weights OIHW.
    x = jax.random.normal(kx, (N, C_IN, H, W), dtype=jnp.float32)
    w1 = 0.1 * jax.random.normal(kw1, (C_MID, C_IN, K, K), dtype=jnp.float32)
    b1 = 0.1 * jax.random.normal(kb1, (C_MID,), dtype=jnp.float32)
    w2 = 0.1 * jax.random.normal(kw2, (C_OUT, C_MID, K, K), dtype=jnp.float32)
    b2 = 0.1 * jax.random.normal(kb2, (C_OUT,), dtype=jnp.float32)

    out = net_forward(x, w1, b1, w2, b2)
    out = jax.block_until_ready(out)

    ref = reference_forward(x, w1, b1, w2, b2)
    assert out.shape == (N, C_OUT, H, W)
    assert jnp.allclose(out, ref, atol=1e-4, rtol=1e-4), "mismatch vs reference"

    print("KERNEL_OK")
</pallas_src>

<mosaic_0001>
module attributes {stable_mosaic.version = 11 : i64} {
  func.func @_net_kernel(%arg0: i32, %arg1: memref<1x27x768xf32, #tpu.memory_space<vmem>>, %arg2: memref<16x27xf32, #tpu.memory_space<vmem>>, %arg3: memref<16x1xf32, #tpu.memory_space<vmem>>, %arg4: memref<3x144xf32, #tpu.memory_space<vmem>>, %arg5: memref<3x1xf32, #tpu.memory_space<vmem>>, %arg6: memref<9x1x512xf32, #tpu.memory_space<vmem>>, %arg7: memref<1x3x512xf32, #tpu.memory_space<vmem>>, %arg8: memref<16x768xf32, #tpu.memory_space<vmem>>) attributes {dimension_semantics = [#tpu.dimension_semantics<parallel>], iteration_bounds = array<i64: 1>, scalar_prefetch = 0 : i64, scratch_operands = 1 : i64, tpu.core_type = #tpu.core_type<tc>, window_params = [{transform_indices = @transform_0, window_bounds = array<i64: 1, 27, 768>}, {pipeline_mode = #tpu.pipeline_mode<synchronous>, transform_indices = @transform_1, window_bounds = array<i64: 16, 27>}, {pipeline_mode = #tpu.pipeline_mode<synchronous>, transform_indices = @transform_2, window_bounds = array<i64: 16, 1>}, {pipeline_mode = #tpu.pipeline_mode<synchronous>, transform_indices = @transform_3, window_bounds = array<i64: 3, 144>}, {pipeline_mode = #tpu.pipeline_mode<synchronous>, transform_indices = @transform_4, window_bounds = array<i64: 3, 1>}, {pipeline_mode = #tpu.pipeline_mode<synchronous>, transform_indices = @transform_5, window_bounds = array<i64: 9, 1, 512>}, {transform_indices = @transform_6, window_bounds = array<i64: 1, 3, 512>}]} {
    %c0 = arith.constant 0 : index
    %c0_0 = arith.constant 0 : index
    %0 = vector.load %arg2[%c0, %c0_0] : memref<16x27xf32, #tpu.memory_space<vmem>>, vector<16x27xf32>
    %c0_1 = arith.constant 0 : index
    %c0_2 = arith.constant 0 : index
    %c0_3 = arith.constant 0 : index
    %1 = vector.load %arg1[%c0_1, %c0_2, %c0_3] : memref<1x27x768xf32, #tpu.memory_space<vmem>>, vector<1x27x768xf32>
    %2 = vector.shape_cast %1 : vector<1x27x768xf32> to vector<27x768xf32>
    %cst = arith.constant dense<0.000000e+00> : vector<16x768xf32>
    %3 = tpu.matmul %0, %2, %cst {dimension_numbers = #tpu.dot_dimension_numbers<[1], [0], [0], [1], [0, 0, 1, 1], [], []>} : vector<16x27xf32>, vector<27x768xf32>, vector<16x768xf32> -> vector<16x768xf32>
    %c0_4 = arith.constant 0 : index
    %c0_5 = arith.constant 0 : index
    %4 = vector.load %arg3[%c0_4, %c0_5] : memref<16x1xf32, #tpu.memory_space<vmem>>, vector<16x1xf32>
    %5 = vector.broadcast %4 : vector<16x1xf32> to vector<16x768xf32>
    %6 = arith.addf %3, %5 : vector<16x768xf32>
    %cst_6 = arith.constant 0.000000e+00 : f32
    %7 = vector.broadcast %cst_6 : f32 to vector<16x768xf32>
    %8 = arith.cmpf ogt, %6, %7 : vector<16x768xf32>
    %cst_7 = arith.constant 1.000000e-01 : f32
    %9 = vector.broadcast %cst_7 : f32 to vector<16x768xf32>
    %10 = arith.mulf %9, %6 : vector<16x768xf32>
    %11 = arith.select %8, %6, %10 : vector<16x768xi1>, vector<16x768xf32>
    %c0_8 = arith.constant 0 : index
    %c0_9 = arith.constant 0 : index
    %12 = vector.load %arg8[%c0_8, %c0_9] : memref<16x768xf32, #tpu.memory_space<vmem>>, vector<16x768xf32>
    tpu.vector_store %arg8[%c0_8, %c0_9], %11 {strides = array<i32>} : memref<16x768xf32, #tpu.memory_space<vmem>>, vector<16x768xf32>,
    %c0_10 = arith.constant 0 : index
    %c111 = arith.constant 111 : index
    %13 = vector.load %arg8[%c0_10, %c111] : memref<16x768xf32, #tpu.memory_space<vmem>>, vector<16x512xf32>
    %c0_11 = arith.constant 0 : index
    %c0_12 = arith.constant 0 : index
    %c0_13 = arith.constant 0 : index
    %14 = vector.load %arg6[%c0_11, %c0_12, %c0_13] : memref<9x1x512xf32, #tpu.memory_space<vmem>>, vector<1x1x512xf32>
    %15 = vector.shape_cast %14 : vector<1x1x512xf32> to vector<1x512xf32>
    %16 = vector.broadcast %15 : vector<1x512xf32> to vector<16x512xf32>
    %17 = arith.mulf %13, %16 : vector<16x512xf32>
    %c0_14 = arith.constant 0 : index
    %c112 = arith.constant 112 : index
    %18 = vector.load %arg8[%c0_14, %c112] : memref<16x768xf32, #tpu.memory_space<vmem>>, vector<16x512xf32>
    %c1 = arith.constant 1 : index
    %c0_15 = arith.constant 0 : index
    %c0_16 = arith.constant 0 : index
    %19 = vector.load %arg6[%c1, %c0_15, %c0_16] : memref<9x1x512xf32, #tpu.memory_space<vmem>>, vector<1x1x512xf32>
    %20 = vector.shape_cast %19 : vector<1x1x512xf32> to vector<1x512xf32>
    %21 = vector.broadcast %20 : vector<1x512xf32> to vector<16x512xf32>
    %22 = arith.mulf %18, %21 : vector<16x512xf32>
    %c0_17 = arith.constant 0 : index
    %c113 = arith.constant 113 : index
    %23 = vector.load %arg8[%c0_17, %c113] : memref<16x768xf32, #tpu.memory_space<vmem>>, vector<16x512xf32>
    %c2 = arith.constant 2 : index
    %c0_18 = arith.constant 0 : index
    %c0_19 = arith.constant 0 : index
    %24 = vector.load %arg6[%c2, %c0_18, %c0_19] : memref<9x1x512xf32, #tpu.memory_space<vmem>>, vector<1x1x512xf32>
    %25 = vector.shape_cast %24 : vector<1x1x512xf32> to vector<1x512xf32>
    %26 = vector.broadcast %25 : vector<1x512xf32> to vector<16x512xf32>
    %27 = arith.mulf %23, %26 : vector<16x512xf32>
    %c0_20 = arith.constant 0 : index
    %c127 = arith.constant 127 : index
    %28 = vector.load %arg8[%c0_20, %c127] : memref<16x768xf32, #tpu.memory_space<vmem>>, vector<16x512xf32>
    %c3 = arith.constant 3 : index
    %c0_21 = arith.constant 0 : index
    %c0_22 = arith.constant 0 : index
    %29 = vector.load %arg6[%c3, %c0_21, %c0_22] : memref<9x1x512xf32, #tpu.memory_space<vmem>>, vector<1x1x512xf32>
    %30 = vector.shape_cast %29 : vector<1x1x512xf32> to vector<1x512xf32>
    %31 = vector.broadcast %30 : vector<1x512xf32> to vector<16x512xf32>
    %32 = arith.mulf %28, %31 : vector<16x512xf32>
    %c0_23 = arith.constant 0 : index
    %c128 = arith.constant 128 : index
    %33 = vector.load %arg8[%c0_23, %c128] : memref<16x768xf32, #tpu.memory_space<vmem>>, vector<16x512xf32>
    %c4 = arith.constant 4 : index
    %c0_24 = arith.constant 0 : index
    %c0_25 = arith.constant 0 : index
    %34 = vector.load %arg6[%c4, %c0_24, %c0_25] : memref<9x1x512xf32, #tpu.memory_space<vmem>>, vector<1x1x512xf32>
    %35 = vector.shape_cast %34 : vector<1x1x512xf32> to vector<1x512xf32>
    %36 = vector.broadcast %35 : vector<1x512xf32> to vector<16x512xf32>
    %37 = arith.mulf %33, %36 : vector<16x512xf32>
    %c0_26 = arith.constant 0 : index
    %c129 = arith.constant 129 : index
    %38 = vector.load %arg8[%c0_26, %c129] : memref<16x768xf32, #tpu.memory_space<vmem>>, vector<16x512xf32>
    %c5 = arith.constant 5 : index
    %c0_27 = arith.constant 0 : index
    %c0_28 = arith.constant 0 : index
    %39 = vector.load %arg6[%c5, %c0_27, %c0_28] : memref<9x1x512xf32, #tpu.memory_space<vmem>>, vector<1x1x512xf32>
    %40 = vector.shape_cast %39 : vector<1x1x512xf32> to vector<1x512xf32>
    %41 = vector.broadcast %40 : vector<1x512xf32> to vector<16x512xf32>
    %42 = arith.mulf %38, %41 : vector<16x512xf32>
    %c0_29 = arith.constant 0 : index
    %c143 = arith.constant 143 : index
    %43 = vector.load %arg8[%c0_29, %c143] : memref<16x768xf32, #tpu.memory_space<vmem>>, vector<16x512xf32>
    %c6 = arith.constant 6 : index
    %c0_30 = arith.constant 0 : index
    %c0_31 = arith.constant 0 : index
    %44 = vector.load %arg6[%c6, %c0_30, %c0_31] : memref<9x1x512xf32, #tpu.memory_space<vmem>>, vector<1x1x512xf32>
    %45 = vector.shape_cast %44 : vector<1x1x512xf32> to vector<1x512xf32>
    %46 = vector.broadcast %45 : vector<1x512xf32> to vector<16x512xf32>
    %47 = arith.mulf %43, %46 : vector<16x512xf32>
    %c0_32 = arith.constant 0 : index
    %c144 = arith.constant 144 : index
    %48 = vector.load %arg8[%c0_32, %c144] : memref<16x768xf32, #tpu.memory_space<vmem>>, vector<16x512xf32>
    %c7 = arith.constant 7 : index
    %c0_33 = arith.constant 0 : index
    %c0_34 = arith.constant 0 : index
    %49 = vector.load %arg6[%c7, %c0_33, %c0_34] : memref<9x1x512xf32, #tpu.memory_space<vmem>>, vector<1x1x512xf32>
    %50 = vector.shape_cast %49 : vector<1x1x512xf32> to vector<1x512xf32>
    %51 = vector.broadcast %50 : vector<1x512xf32> to vector<16x512xf32>
    %52 = arith.mulf %48, %51 : vector<16x512xf32>
    %c0_35 = arith.constant 0 : index
    %c145 = arith.constant 145 : index
    %53 = vector.load %arg8[%c0_35, %c145] : memref<16x768xf32, #tpu.memory_space<vmem>>, vector<16x512xf32>
    %c8 = arith.constant 8 : index
    %c0_36 = arith.constant 0 : index
    %c0_37 = arith.constant 0 : index
    %54 = vector.load %arg6[%c8, %c0_36, %c0_37] : memref<9x1x512xf32, #tpu.memory_space<vmem>>, vector<1x1x512xf32>
    %55 = vector.shape_cast %54 : vector<1x1x512xf32> to vector<1x512xf32>
    %56 = vector.broadcast %55 : vector<1x512xf32> to vector<16x512xf32>
    %57 = arith.mulf %53, %56 : vector<16x512xf32>
    %58 = tpu.concatenate %17, %22, %27, %32, %37, %42, %47, %52, %57 in 0 : vector<16x512xf32>, vector<16x512xf32>, vector<16x512xf32>, vector<16x512xf32>, vector<16x512xf32>, vector<16x512xf32>, vector<16x512xf32>, vector<16x512xf32>, vector<16x512xf32> -> vector<144x512xf32>
    %c0_38 = arith.constant 0 : index
    %c0_39 = arith.constant 0 : index
    %59 = vector.load %arg4[%c0_38, %c0_39] : memref<3x144xf32, #tpu.memory_space<vmem>>, vector<3x144xf32>
    %cst_40 = arith.constant dense<0.000000e+00> : vector<3x512xf32>
    %60 = tpu.matmul %59, %58, %cst_40 {dimension_numbers = #tpu.dot_dimension_numbers<[1], [0], [0], [1], [0, 0, 1, 1], [], []>} : vector<3x144xf32>, vector<144x512xf32>, vector<3x512xf32> -> vector<3x512xf32>
    %c0_41 = arith.constant 0 : index
    %c0_42 = arith.constant 0 : index
    %61 = vector.load %arg5[%c0_41, %c0_42] : memref<3x1xf32, #tpu.memory_space<vmem>>, vector<3x1xf32>
    %62 = vector.broadcast %61 : vector<3x1xf32> to vector<3x512xf32>
    %63 = arith.addf %60, %62 : vector<3x512xf32>
    %c0_43 = arith.constant 0 : index
    %c0_44 = arith.constant 0 : index
    %c0_45 = arith.constant 0 : index
    %64 = vector.load %arg7[%c0_43, %c0_44, %c0_45] : memref<1x3x512xf32, #tpu.memory_space<vmem>>, vector<1x3x512xf32>
    %65 = vector.shape_cast %64 : vector<1x3x512xf32> to vector<3x512xf32>
    %66 = vector.shape_cast %63 : vector<3x512xf32> to vector<1x3x512xf32>
    tpu.vector_store %arg7[%c0_43, %c0_44, %c0_45], %66 {strides = array<i32>} : memref<1x3x512xf32, #tpu.memory_space<vmem>>, vector<1x3x512xf32>,
    return
  }
  func.func @transform_0(%arg0: i32) -> (i32, i32, i32) {
    %c0_i32 = arith.constant 0 : i32
    %c0_i32_0 = arith.constant 0 : i32
    %c0_i32_1 = arith.constant 0 : i32
    return %arg0, %c0_i32, %c0_i32_0 : i32, i32, i32
  }
  func.func @transform_1(%arg0: i32) -> (i32, i32) {
    %c0_i32 = arith.constant 0 : i32
    %c0_i32_0 = arith.constant 0 : i32
    %c0_i32_1 = arith.constant 0 : i32
    return %c0_i32, %c0_i32_0 : i32, i32
  }
  func.func @transform_2(%arg0: i32) -> (i32, i32) {
    %c0_i32 = arith.constant 0 : i32
    %c0_i32_0 = arith.constant 0 : i32
    %c0_i32_1 = arith.constant 0 : i32
    return %c0_i32, %c0_i32_0 : i32, i32
  }
  func.func @transform_3(%arg0: i32) -> (i32, i32) {
    %c0_i32 = arith.constant 0 : i32
    %c0_i32_0 = arith.constant 0 : i32
    %c0_i32_1 = arith.constant 0 : i32
    return %c0_i32, %c0_i32_0 : i32, i32
  }
  func.func @transform_4(%arg0: i32) -> (i32, i32) {
    %c0_i32 = arith.constant 0 : i32
    %c0_i32_0 = arith.constant 0 : i32
    %c0_i32_1 = arith.constant 0 : i32
    return %c0_i32, %c0_i32_0 : i32, i32
  }
  func.func @transform_5(%arg0: i32) -> (i32, i32, i32) {
    %c0_i32 = arith.constant 0 : i32
    %c0_i32_0 = arith.constant 0 : i32
    %c0_i32_1 = arith.constant 0 : i32
    %c0_i32_2 = arith.constant 0 : i32
    return %c0_i32, %c0_i32_0, %c0_i32_1 : i32, i32, i32
  }
  func.func @transform_6(%arg0: i32) -> (i32, i32, i32) {
    %c0_i32 = arith.constant 0 : i32
    %c0_i32_0 = arith.constant 0 : i32
    %c0_i32_1 = arith.constant 0 : i32
    return %arg0, %c0_i32, %c0_i32_0 : i32, i32, i32
  }
}

</mosaic_0001>

<bundles_post_ra>
// kernel: tpu_custom_call.1
= control target key start
LH: loop header
LB: loop body
LE: loop exit
PB: predicated region body
PF: predicated region fallthrough
CT: control target
= control target key end

     0   :  { %vm68_vm0 = vcmask 1042432   ;;  %v2148_v3 = vmov 0.0   ;;  %v378_v4 = vlaneseq  ;;  %v2149_v9 = vmov 0   ;;  %s2152_s7 = smov 113   ;;  %s2153_s10 = smov 127   ;;  %s3522_s0 = inlined_call_operand.vmem [shape: f32[1,27,768], index: 0, kind: input, shape index: {}]   ;;  %s3523_s1 = inlined_call_operand.vmem [shape: f32[16,27], index: 1, kind: input, shape index: {}]   ;;  %s3524_s2 = inlined_call_operand.vmem [shape: f32[16,1], index: 2, kind: input, shape index: {}]   ;;  %s3525_s5 = inlined_call_operand.vmem [shape: f32[9,1,512], index: 5, kind: input, shape index: {}]   ;;  %s3526_s3 = inlined_call_operand.vmem [shape: f32[3,144], index: 3, kind: input, shape index: {}]   ;;  %s3527_s4 = inlined_call_operand.vmem [shape: f32[3,1], index: 4, kind: input, shape index: {}]   ;;  %s3528_s6 = inlined_call_operand.vmem [shape: f32[1,3,512], index: 6, kind: output, shape index: {}]  }
   0x1   :  { %v26_v0 = vld [vmem:[%s3522_s0 + $0x8] sm:$0xff]  ;;  %v32_v1 = vld [vmem:[%s3522_s0 + $0x38] sm:$0xff]  ;;  %151 = vmatprep.mubr.f32.mxu0 %v2148_v3  ;;  %228 = vmatprep.mubr.f32.mxu1 %v2148_v3  ;;  %v25_v7 = vld [vmem:[%s3522_s0] sm:$0xff]  ;;  %vm2150_vm1 = vmmov 1   ;;  %vm61_vm3 = vcmask 220160   ;;  %s2154_s13 = smov 1  }
   0x2   :  { %v28_v2 = vld [vmem:[%s3522_s0 + $0x18] sm:$0xff]  ;;  %v1608_v5 = vpack.c.bf16 %v32_v1, %v26_v0  ;;  %v34_v6 = vld [vmem:[%s3522_s0 + $0x48] sm:$0xff]  ;;  %v31_v8 = vld [vmem:[%s3522_s0 + $0x30] sm:$0xff]  ;;  %1726 = vset.pattern.permute.xlu0 %v2149_v9  ;;  %v379_v19 = vshrl.u32 %v378_v4, 7  ;;  %s2155_s16 = smov 15   ;;  %s2156_s19 = smov 16  }
   0x3   :  { %v1618_v10 = vpack.c.bf16 %v34_v6, %v28_v2  ;;  %v1610_v11 = vpack.c.bf16 %v31_v8, %v25_v7  ;;  %v27_v12 = vld [vmem:[%s3522_s0 + $0x10] sm:$0xff]  ;;  %v33_v13 = vld [vmem:[%s3522_s0 + $0x40] sm:$0xff]  ;;  %v38_v14 = vld [vmem:[%s3522_s0 + $0x68] sm:$0xff]  ;;  %s2157_s22 = smov 17   ;;  %s2158_s25 = smov 111   ;;  %vm448_vm4 = vcmask 916480  }
   0x4   :  { %1609 = vmatprep.subr.bf16.mxu0 %v1608_v5  ;;  %v1620_v15 = vpack.c.bf16 %v33_v13, %v27_v12  ;;  %v44_v16 = vld [vmem:[%s3522_s0 + $0x98] sm:$0x7]  ;;  %vm2232_vm2 = vmpackc.low %vm68_vm0, %vm2150_vm1  ;;  %v46_v21 = vld [vmem:[%s3522_s0 + $0xa8] sm:$0x7]  ;;  %v2273_v35 = vsub.s32 0, %v379_v19  ;;  %v2297_v44 = vsub.s32 2, %v379_v19 }
   0x5   :  { %v40_v18 = vld [vmem:[%s3522_s0 + $0x78] sm:$0xff]  ;;  %1619 = vmatprep.subr.bf16.mxu1 %v1618_v10  ;;  %1611 = vmatpush1.bf16.msra.mxu0 %v1610_v11  ;;  %v1612_v20 = vpack.c.bf16 %v44_v16, %v38_v14  ;;  %v37_v22 = vld [vmem:[%s3522_s0 + $0x60] sm:$0xff]  ;;  %v43_v23 = vld [vmem:[%s3522_s0 + $0x90] sm:$0x7]  ;;  %v2304_v47 = vsub.s32 1, %v379_v19  ;;  %v2318_v52 = vsub.s32 3, %v379_v19 }
   0x6   :  { %1621 = vmatpush1.bf16.msra.mxu1 %v1620_v15  ;;  %v1622_v24 = vpack.c.bf16 %v46_v21, %v40_v18  ;;  %v1615_v25 = vpack.c.bf16 %v43_v23, %v37_v22  ;;  %v39_v26 = vld [vmem:[%s3522_s0 + $0x70] sm:$0xff]  ;;  %v45_v27 = vld [vmem:[%s3522_s0 + $0xa0] sm:$0x7]  ;;  %v30_v29 = vld [vmem:[%s3522_s0 + $0x28] sm:$0xff]  ;;  %vm494_vm5 = vcmask 924672   ;;  %vm540_vm6 = vcmask 1039360  }
   0x7   :  { %1614 = vmatprep.subr.msk.bf16.mxu0 %vm2232_vm2, %v1612_v20  ;;  %v1625_v28 = vpack.c.bf16 %v45_v27, %v39_v26  ;;  %v36_v30 = vld [vmem:[%s3522_s0 + $0x58] sm:$0xff]  ;;  %v29_v31 = vld [vmem:[%s3522_s0 + $0x20] sm:$0xff]  ;;  %v35_v33 = vld [vmem:[%s3522_s0 + $0x50] sm:$0xff]  ;;  %vm627_vm7 = vcmask 7168   ;;  %vm673_vm8 = vcmask 121856   ;;  %vm719_vm9 = vcmask 130048  }
   0x8   :  { %1624 = vmatprep.subr.msk.bf16.mxu1 %vm2232_vm2, %v1622_v24  ;;  %v1628_v32 = vpack.c.bf16 %v36_v30, %v30_v29  ;;  %v42_v34 = vld [vmem:[%s3522_s0 + $0x88] sm:$0xff]  ;;  %v23_v36 = vld [vmem:[%s3523_s1] sm:$0xff]  ;;  %v1630_v37 = vpack.c.bf16 %v35_v33, %v29_v31  ;;  %v48_v38 = vld [vmem:[%s3522_s0 + $0xb8] sm:$0x7]  ;;  %vm765_vm10 = vcmask 138240   ;;  %vm402_vm11 = vcmask 908288  }
   0x9   :  { %1617 = vmatpush1.bf16.msk.msra.mxu0 %vm2232_vm2, %v1615_v25  ;;  %v41_v39 = vld [vmem:[%s3522_s0 + $0x80] sm:$0xff]  ;;  %v47_v40 = vld [vmem:[%s3522_s0 + $0xb0] sm:$0x7]  ;;  %v1632_v43 = vpack.c.bf16 %v48_v38, %v42_v34  ;;  %v50_v45 = vld [vmem:[%s3524_s2 + $0x8] sm:$0xff]  ;;  %s2160_s28 = smov 110   ;;  %s2161_s0 = smov 96  }
   0xa   :  { %1627 = vmatpush1.bf16.msk.msra.mxu1 %vm2232_vm2, %v1625_v28  ;;  %1629 = vmatprep.subr.bf16.mxu0 %v1628_v32  ;;  %v49_v41 = vld [vmem:[%s3524_s2] sm:$0xff]  ;;  %v24_v48 = vld [vmem:[%s3523_s1 + $0x8] sm:$0xff]  ;;  %v1635_v49 = vpack.c.bf16 %v47_v40, %v41_v39  ;;  %s2151_s2 = smov 112   ;;  %v1602_v63 = vld [vmem:[%s3525_s5 + $0x14] sm:$0xf]  ;;  %s2162_s29 = smov 95  }
   0xb   :  { %v1598_v42 = vld [vmem:[%s3525_s5 + $0x4] sm:$0xf]  ;;  %53 = vperm.xlu0 %1726, %v49_v41   ;;  %v1599_v53 = vld [vmem:[%s3525_s5 + $0x8] sm:$0xf]  ;;  %v1600_v58 = vld [vmem:[%s3525_s5 + $0xc] sm:$0xf]  ;;  %v606_v0 = vrot.slane %v1602_v63, %v2273_v35  ;;  %v614_v2 = vrot.slane %v1602_v63, %v2297_v44  ;;  %v618_v6 = vrot.slane %v1602_v63, %v2318_v52 }
   0xc   :  { %1588 = vmatmul.mubr.msk.f32.vlgmr.msra.gmra.mrb[0].mxu0 %vm61_vm3, %v23_v36  ;;  %v427_v46 = vrot.slane %v1598_v42, %v2273_v35  ;;  %v435_v50 = vrot.slane %v1598_v42, %v2297_v44  ;;  %v431_v51 = vrot.slane %v1598_v42, %v2304_v47  ;;  %v473_v54 = vrot.slane %v1599_v53, %v2273_v35  ;;  %v1603_v4 = vld [vmem:[%s3525_s5 + $0x18] sm:$0xf]  ;;  %v1604_v9 = vld [vmem:[%s3525_s5 + $0x1c] sm:$0xf]  ;;  %v1605_v14 = vld [vmem:[%s3525_s5 + $0x20] sm:$0xf] }
   0xd   :  { %1592 = vmatmul.mubr.msk.f32.vlgmr.msra.gmra.mrb[0].mxu1 %vm61_vm3, %v23_v36  ;;  %1631 = vmatpush1.bf16.msra.mxu0 %v1630_v37  ;;  %v439_v55 = vrot.slane %v1598_v42, %v2318_v52  ;;  %v481_v56 = vrot.slane %v1599_v53, %v2297_v44  ;;  %v477_v57 = vrot.slane %v1599_v53, %v2304_v47  ;;  %v376_v19 = vld [vmem:[%s3525_s5] sm:$0xf]  ;;  %s2163_s1 = smov 94  }
   0xe   :  { %157 = vmatprep.mubr.f32.mxu0 %v2148_v3  ;;  %234 = vmatprep.mubr.f32.mxu1 %v2148_v3  ;;  %v519_v59 = vrot.slane %v1600_v58, %v2273_v35  ;;  %v485_v60 = vrot.slane %v1599_v53, %v2318_v52  ;;  %v527_v61 = vrot.slane %v1600_v58, %v2297_v44 }
   0xf   :  { %1634 = vmatprep.subr.msk.bf16.mxu0 %vm2232_vm2, %v1632_v43  ;;  %58 = vperm.xlu0 %1726, %v50_v45   ;;  %v523_v62 = vrot.slane %v1600_v58, %v2304_v47  ;;  %v531_v1 = vrot.slane %v1600_v58, %v2318_v52  ;;  %v652_v5 = vrot.slane %v1603_v4, %v2273_v35 }
  0x10   :  { %1589 = vmatmul.mubr.msk.f32.gmra.mrb[2].mxu0 %vm61_vm3, %v24_v48  ;;  %440 = vrot.lane.b32.xlu1 %v427_v46, %s2151_s2  ;;  %v660_v7 = vrot.slane %v1603_v4, %v2297_v44  ;;  %v656_v8 = vrot.slane %v1603_v4, %v2304_v47  ;;  %v698_v10 = vrot.slane %v1604_v9, %v2273_v35 }
  0x11   :  { %1593 = vmatmul.mubr.msk.f32.gmra.mrb[2].mxu1 %vm61_vm3, %v24_v48  ;;  %1637 = vmatpush1.bf16.msk.msra.mxu0 %vm2232_vm2, %v1635_v49  ;;  %v664_v11 = vrot.slane %v1603_v4, %v2318_v52  ;;  %v706_v12 = vrot.slane %v1604_v9, %v2297_v44  ;;  %v702_v13 = vrot.slane %v1604_v9, %v2304_v47 }
  0x12   :  { %305 = vmatprep.mubr.f32.mxu0 %v2148_v3  ;;  %v744_v15 = vrot.slane %v1605_v14, %v2273_v35  ;;  %v710_v16 = vrot.slane %v1604_v9, %v2318_v52  ;;  %v752_v17 = vrot.slane %v1605_v14, %v2297_v44  ;;  %v748_v18 = vrot.slane %v1605_v14, %v2304_v47 }
  0x13   :  { %444 = vrot.lane.b32.xlu0 %v435_v50, %s2151_s2  ;;  %v381_v20 = vrot.slane %v376_v19, %v2273_v35  ;;  %v756_v21 = vrot.slane %v1605_v14, %v2318_v52  ;;  %v389_v22 = vrot.slane %v376_v19, %v2297_v44  ;;  %v385_v23 = vrot.slane %v376_v19, %v2304_v47 }
  0x14   :  { %1596 = vmatmul.mubr.msk.f32.vlgmr.msra.gmra.mrb[4].mxu0 %vm61_vm3, %v23_v36  ;;  %442 = vrot.lane.b32.xlu1 %v431_v51, %s2151_s2  ;;  %v393_v24 = vrot.slane %v376_v19, %v2318_v52 }
  0x15   :  { %311 = vmatprep.mubr.f32.mxu0 %v2148_v3  ;;  %v610_v3 = vrot.slane %v1602_v63, %v2304_v47 }
  0x17   :  { %486 = vrot.lane.b32.xlu0 %v473_v54, %s2152_s7 }
  0x18   :  { %1597 = vmatmul.mubr.msk.f32.gmra.mrb[6].mxu0 %vm61_vm3, %v24_v48  ;;  %446 = vrot.lane.b32.xlu1 %v439_v55, %s2151_s2 }
  0x1b   :  { %490 = vrot.lane.b32.xlu0 %v481_v56, %s2152_s7 }
  0x1c   :  { %488 = vrot.lane.b32.xlu1 %v477_v57, %s2152_s7 }
  0x1f   :  { %532 = vrot.lane.b32.xlu0 %v519_v59, %s2153_s10  ;;  %v1601_v59 = vld [vmem:[%s3525_s5 + $0x10] sm:$0xf]  ;;  %s2159_s5 = smov 126  }
  0x20   :  { %492 = vrot.lane.b32.xlu1 %v485_v60, %s2152_s7 }
  0x23   :  { %536 = vrot.lane.b32.xlu0 %v527_v61, %s2153_s10  ;;  %v2430_v61 = vrot.slane %v1601_v59, %v2304_v47 }
  0x24   :  { %534 = vrot.lane.b32.xlu1 %v523_v62, %s2153_s10 }
  0x27   :  { %619 = vrot.lane.b32.xlu0 %v606_v0, %s2154_s13  ;;  %v2437_v0 = vrot.slane %v1601_v59, %v2273_v35 }
  0x28   :  { %538 = vrot.lane.b32.xlu1 %v531_v1, %s2153_s10  ;;  %v2440_v1 = vrot.slane %v1601_v59, %v2297_v44 }
  0x2b   :  { %623 = vrot.lane.b32.xlu0 %v614_v2, %s2154_s13  ;;  %v2443_v2 = vrot.slane %v1601_v59, %v2318_v52 }
  0x2c   :  { %621 = vrot.lane.b32.xlu1 %v610_v3, %s2154_s13 }
  0x2f   :  { %665 = vrot.lane.b32.xlu0 %v652_v5, %s2155_s16 }
  0x30   :  { %625 = vrot.lane.b32.xlu1 %v618_v6, %s2154_s13 }
  0x33   :  { %669 = vrot.lane.b32.xlu0 %v660_v7, %s2155_s16 }
  0x34   :  { %667 = vrot.lane.b32.xlu1 %v656_v8, %s2155_s16 }
  0x37   :  { %711 = vrot.lane.b32.xlu0 %v698_v10, %s2156_s19 }
  0x38   :  { %671 = vrot.lane.b32.xlu1 %v664_v11, %s2155_s16 }
  0x3b   :  { %715 = vrot.lane.b32.xlu0 %v706_v12, %s2156_s19 }
  0x3c   :  { %713 = vrot.lane.b32.xlu1 %v702_v13, %s2156_s19 }
  0x3f   :  { %757 = vrot.lane.b32.xlu0 %v744_v15, %s2157_s22 }
  0x40   :  { %717 = vrot.lane.b32.xlu1 %v710_v16, %s2156_s19 }
  0x43   :  { %761 = vrot.lane.b32.xlu0 %v752_v17, %s2157_s22 }
  0x44   :  { %759 = vrot.lane.b32.xlu1 %v748_v18, %s2157_s22 }
  0x47   :  { %394 = vrot.lane.b32.xlu0 %v381_v20, %s2158_s25 }
  0x48   :  { %763 = vrot.lane.b32.xlu1 %v756_v21, %s2157_s22 }
  0x4b   :  { %398 = vrot.lane.b32.xlu0 %v389_v22, %s2158_s25 }
  0x4c   :  { %396 = vrot.lane.b32.xlu1 %v385_v23, %s2158_s25 }
  0x50   :  { %400 = vrot.lane.b32.xlu1 %v393_v24, %s2158_s25 }
  0x82   :  { %v2392_v25 = vpop.permute.xlu1 %440 }
  0x86   :  { %v443_v26 = vpop.permute.xlu1 %442 }
  0x87   :  { %v2434_v62 = vsel %vm448_vm4, %v2392_v25, %v443_v26 }
  0x8a   :  { %v2394_v27 = vpop.permute.xlu0 %53  ;;  %v2396_v28 = vpop.permute.xlu1 %446 }
  0x8e   :  { %v2398_v29 = vpop.permute.xlu0 %58  ;;  %v489_v31 = vpop.permute.xlu1 %488 }
  0x92   :  { %v445_v30 = vpop.permute.xlu0 %444  ;;  %v2402_v33 = vpop.permute.xlu1 %492 }
  0x93   :  { %v2446_v3 = vsel %vm448_vm4, %v443_v26, %v445_v30  ;;  %v2450_v47 = vsel %vm448_vm4, %v445_v30, %v2396_v28 }
  0x96   :  { %v2400_v32 = vpop.permute.xlu0 %486  ;;  %v535_v37 = vpop.permute.xlu1 %534 }
  0x97   :  { %v2454_v4 = vsel %vm494_vm5, %v2400_v32, %v489_v31 }
  0x9a   :  { %v491_v34 = vpop.permute.xlu0 %490  ;;  %v2406_v39 = vpop.permute.xlu1 %538 }
  0x9b   :  { %v2457_v35 = vsel %vm494_vm5, %v489_v31, %v491_v34  ;;  %v2461_v44 = vsel %vm494_vm5, %v491_v34, %v2402_v33 }
  0x9e   :  { %v2404_v36 = vpop.permute.xlu0 %532  ;;  %v622_v41 = vpop.permute.xlu1 %621 }
  0x9f   :  { %v2465_v52 = vsel %vm540_vm6, %v2404_v36, %v535_v37 }
  0xa2   :  { %v537_v38 = vpop.permute.xlu0 %536  ;;  %v2410_v43 = vpop.permute.xlu1 %625 }
  0xa3   :  { %3551 = vst [vmem:[#allocation4_spill] sm:$0xff] %v2410_v43  ;;  %v2468_v5 = vsel %vm540_vm6, %v535_v37, %v537_v38  ;;  %v2472_v6 = vsel %vm540_vm6, %v537_v38, %v2406_v39 }
  0xa6   :  { %v2408_v40 = vpop.permute.xlu0 %619  ;;  %v668_v46 = vpop.permute.xlu1 %667 }
  0xa7   :  { %3550 = vst [vmem:[#allocation3_spill] sm:$0xff] %v2408_v40  ;;  %v2476_v7 = vsel %vm627_vm7, %v2408_v40, %v622_v41 }
  0xaa   :  { %v624_v42 = vpop.permute.xlu0 %623  ;;  %v2414_v49 = vpop.permute.xlu1 %671 }
  0xab   :  { %3552 = vst [vmem:[#allocation5_spill] sm:$0xff] %v2414_v49  ;;  %v2479_v8 = vsel %vm627_vm7, %v622_v41, %v624_v42  ;;  %v2483_v9 = vsel %vm627_vm7, %v624_v42, %v2410_v43 }
  0xae   :  { %v2412_v45 = vpop.permute.xlu0 %665  ;;  %v714_v51 = vpop.permute.xlu1 %713 }
  0xaf   :  { %v2487_v10 = vsel %vm673_vm8, %v2412_v45, %v668_v46 }
  0xb2   :  { %v670_v48 = vpop.permute.xlu0 %669  ;;  %v2418_v54 = vpop.permute.xlu1 %717 }
  0xb3   :  { %3553 = vst [vmem:[#allocation6_spill] sm:$0xff] %v2418_v54  ;;  %v2490_v11 = vsel %vm673_vm8, %v668_v46, %v670_v48  ;;  %v2494_v12 = vsel %vm673_vm8, %v670_v48, %v2414_v49 }
  0xb4   :  { %3555 = vst [vmem:[#allocation8_spill] sm:$0xff] %v2494_v12 }
  0xb6   :  { %v2416_v50 = vpop.permute.xlu0 %711  ;;  %v760_v56 = vpop.permute.xlu1 %759 }
  0xb7   :  { %v2498_v13 = vsel %vm719_vm9, %v2416_v50, %v714_v51 }
  0xba   :  { %v716_v53 = vpop.permute.xlu0 %715  ;;  %v2422_v58 = vpop.permute.xlu1 %763 }
  0xbb   :  { %3554 = vst [vmem:[#allocation7_spill] sm:$0xff] %v2422_v58  ;;  %v2501_v14 = vsel %vm719_vm9, %v714_v51, %v716_v53  ;;  %v2505_v17 = vsel %vm719_vm9, %v716_v53, %v2418_v54 }
  0xbe   :  { %v2420_v55 = vpop.permute.xlu0 %757  ;;  %v397_v63 = vpop.permute.xlu1 %396 }
  0xbf   :  { %v2509_v18 = vsel %vm765_vm10, %v2420_v55, %v760_v56 }
  0xc2   :  { %v762_v57 = vpop.permute.xlu0 %761  ;;  %v2525_v34 = vpop.permute.xlu1 %400 }
  0xc3   :  { %v2512_v19 = vsel %vm765_vm10, %v760_v56, %v762_v57  ;;  %v2517_v23 = vsel %vm765_vm10, %v762_v57, %v2422_v58 }
  0xc4   :  { %3556 = vst [vmem:[#allocation9_spill] sm:$0xff] %v2517_v23 }
  0xc6   :  { %v2427_v60 = vpop.permute.xlu0 %394 }
  0xc7   :  { %v2522_v26 = vsel %vm402_vm11, %v2427_v60, %v397_v63 }
  0xca   :  { %v399_v16 = vpop.permute.xlu0 %398 }
  0xcb   :  { %v2529_v41 = vsel %vm402_vm11, %v397_v63, %v399_v16  ;;  %v2535_v57 = vsel %vm402_vm11, %v399_v16, %v2525_v34 }
  0xcc   :  { %3557 = vst [vmem:[#allocation10_spill] sm:$0xff] %v2535_v57 }
  0xdf   :  { %v153_v15 = vpop.f32.mrb[0].mxu0 }
  0xe0   :  { %v154_v20 = vadd.f32 %v153_v15, %v2394_v27  ;;  %v230_v21 = vpop.f32.mrb[0].mxu1  ;;  %v155_v22 = vpop.f32.mrb[1].mxu0 }
  0xe1   :  { %v231_v24 = vadd.f32 %v230_v21, %v2394_v27  ;;  %v156_v30 = vadd.f32 %v155_v22, %v2394_v27  ;;  %v232_v31 = vpop.f32.mrb[1].mxu1 }
  0xe2   :  { %vm318_vm12 = vcmp.gt.f32.partialorder %v154_v20, 0.0  ;;  %v330_v37 = vmul.f32 0.1, %v154_v20  ;;  %v233_v38 = vadd.f32 %v232_v31, %v2394_v27 }
  0xe3   :  { %vm320_vm13 = vcmp.gt.f32.partialorder %v231_v24, 0.0  ;;  %v332_v42 = vmul.f32 0.1, %v231_v24  ;;  %vm319_vm14 = vcmp.gt.f32.partialorder %v156_v30, 0.0  ;;  %v331_v46 = vmul.f32 0.1, %v156_v30 }
  0xe4   :  { %v2531_v48 = vsel %vm318_vm12, %v154_v20, %v330_v37  ;;  %vm321_vm15 = vcmp.gt.f32.partialorder %v233_v38, 0.0  ;;  %v333_v51 = vmul.f32 0.1, %v233_v38  ;;  %v159_v53 = vpop.f32.mrb[2].mxu0  ;;  %v236_v56 = vpop.f32.mrb[2].mxu1 }
  0xe5   :  { %v2537_v59 = vsel %vm320_vm13, %v231_v24, %v332_v42  ;;  %v2539_v15 = vsel %vm319_vm14, %v156_v30, %v331_v46  ;;  %v160_v63 = vadd.f32 %v159_v53, %v2398_v29  ;;  %v237_v21 = vadd.f32 %v236_v56, %v2398_v29  ;;  %v161_v22 = vpop.f32.mrb[3].mxu0  ;;  %v238_v31 = vpop.f32.mrb[3].mxu1 }
  0xe6   :  { %v2543_v20 = vsel %vm321_vm15, %v233_v38, %v333_v51  ;;  %v2547_v37 = vmul.f32 %v2529_v41, %v2537_v59  ;;  %v162_v54 = vadd.f32 %v161_v22, %v2398_v29  ;;  %v239_v16 = vadd.f32 %v238_v31, %v2398_v29 }
  0xe7   :  { %vm324_vm0 = vcmp.gt.f32.partialorder %v160_v63, 0.0  ;;  %v336_v24 = vmul.f32 0.1, %v160_v63  ;;  %vm326_vm1 = vcmp.gt.f32.partialorder %v237_v21, 0.0  ;;  %v338_v30 = vmul.f32 0.1, %v237_v21 }
  0xe8   :  { %v2553_v42 = vmul.f32 %v2535_v57, %v2543_v20  ;;  %vm325_vm2 = vcmp.gt.f32.partialorder %v162_v54, 0.0  ;;  %v337_v46 = vmul.f32 0.1, %v162_v54  ;;  %vm327_vm3 = vcmp.gt.f32.partialorder %v239_v16, 0.0  ;;  %v307_v38 = vpop.f32.mrb[4].mxu0 }
  0xe9   :  { %v2555_v51 = vsel %vm324_vm0, %v160_v63, %v336_v24  ;;  %v2557_v53 = vsel %vm326_vm1, %v237_v21, %v338_v30  ;;  %v339_v56 = vmul.f32 0.1, %v239_v16  ;;  %v308_v22 = vadd.f32 %v307_v38, %v2394_v27  ;;  %v309_v31 = vpop.f32.mrb[5].mxu0 }
  0xea   :  { %3558 = vst [vmem:[#allocation11_spill] sm:$0xff] %v2553_v42  ;;  %v2560_v43 = vsel %vm325_vm2, %v162_v54, %v337_v46  ;;  %v310_v58 = vadd.f32 %v309_v31, %v2394_v27  ;;  %v504_v57 = vmul.f32 %v2454_v4, %v2539_v15  ;;  %v505_v23 = vmul.f32 %v2457_v35, %v2537_v59 }
  0xeb   :  { %v2567_v42 = vsel %vm327_vm3, %v239_v16, %v339_v56  ;;  %vm322_vm5 = vcmp.gt.f32.partialorder %v308_v22, 0.0  ;;  %v334_v63 = vmul.f32 0.1, %v308_v22  ;;  %v458_v21 = vmul.f32 %v2434_v62, %v2539_v15  ;;  %v313_v24 = vpop.f32.mrb[6].mxu0 }
  0xec   :  { %vm323_vm7 = vcmp.gt.f32.partialorder %v310_v58, 0.0  ;;  %v335_v30 = vmul.f32 0.1, %v310_v58  ;;  %v1732_v54 = vpack.i.bf16 %v505_v23, %v504_v57  ;;  %v459_v27 = vmul.f32 %v2446_v3, %v2537_v59  ;;  %v315_v46 = vpop.f32.mrb[7].mxu0 }
  0xed   :  { %v2573_v38 = vsel %vm322_vm5, %v308_v22, %v334_v63  ;;  %v314_v31 = vadd.f32 %v313_v24, %v2398_v29  ;;  %v316_v16 = vadd.f32 %v315_v46, %v2398_v29  ;;  %v582_v56 = vmul.f32 %v2437_v0, %v2539_v15 }
  0xee   :  { %v2579_v49 = vsel %vm323_vm7, %v310_v58, %v335_v30  ;;  %1733 = vrot.lane.b32.xlu1 %v1732_v54, %s2159_s5  ;;  %v1727_v12 = vpack.i.bf16 %v459_v27, %v458_v21  ;;  %v583_v23 = vmul.f32 %v2430_v61, %v2537_v59  ;;  %v550_v57 = vmul.f32 %v2465_v52, %v2539_v15 }
  0xef   :  { %vm328_vm8 = vcmp.gt.f32.partialorder %v314_v31, 0.0  ;;  %v340_v22 = vmul.f32 0.1, %v314_v31  ;;  %vm329_vm12 = vcmp.gt.f32.partialorder %v316_v16, 0.0  ;;  %v341_v63 = vmul.f32 0.1, %v316_v16 }
  0xf0   :  { %1728 = vrot.lane.b32.xlu0 %v1727_v12, %s2153_s10  ;;  %v1742_v29 = vpack.i.bf16 %v583_v23, %v582_v56  ;;  %v551_v58 = vmul.f32 %v2468_v5, %v2537_v59  ;;  %v636_v24 = vmul.f32 %v2408_v40, %v2539_v15  ;;  %v637_v21 = vmul.f32 %v2476_v7, %v2537_v59 }
  0xf1   :  { %v2593_v30 = vsel %vm328_vm8, %v314_v31, %v340_v22  ;;  %v2595_v54 = vsel %vm329_vm12, %v316_v16, %v341_v63  ;;  %v682_v27 = vmul.f32 %v2412_v45, %v2539_v15  ;;  %v683_v12 = vmul.f32 %v2487_v10, %v2537_v59 }
  0xf2   :  { %1743 = vrot.lane.b32.xlu1 %v1742_v29, %s2158_s25  ;;  %v1737_v46 = vpack.i.bf16 %v551_v58, %v550_v57  ;;  %v1747_v56 = vpack.i.bf16 %v637_v21, %v636_v24  ;;  %v728_v23 = vmul.f32 %v2416_v50, %v2539_v15  ;;  %v729_v40 = vmul.f32 %v2498_v13, %v2537_v59 }
  0xf3   :  { %v1752_v31 = vpack.i.bf16 %v683_v12, %v682_v27  ;;  %v774_v16 = vmul.f32 %v2420_v55, %v2539_v15  ;;  %v775_v22 = vmul.f32 %v2509_v18, %v2537_v59  ;;  %v412_v63 = vmul.f32 %v2522_v26, %v2539_v15 }
  0xf4   :  { %1738 = vrot.lane.b32.xlu0 %v1737_v46, %s2151_s2  ;;  %v1757_v57 = vpack.i.bf16 %v729_v40, %v728_v23  ;;  %v457_v29 = vmul.f32 %v2392_v25, %v2531_v48  ;;  %v462_v58 = vmul.f32 %v2392_v25, %v2555_v51  ;;  %v2619_v24 = vmul.f32 %v2400_v32, %v2531_v48 }
  0xf5   :  { %v1762_v21 = vpack.i.bf16 %v775_v22, %v774_v16  ;;  %v1767_v27 = vpack.i.bf16 %v2547_v37, %v412_v63  ;;  %v508_v59 = vmul.f32 %v2400_v32, %v2555_v51  ;;  %v2626_v15 = vmul.f32 %v2404_v36, %v2531_v48 }
  0xf6   :  { %1748 = vrot.lane.b32.xlu1 %v1747_v56, %s2160_s28  ;;  %v1772_v40 = vpack.i.bf16 %v462_v58, %v457_v29  ;;  %v2631_v25 = vmul.f32 %v2404_v36, %v2555_v51  ;;  %v2635_v12 = vmul.f32 %v2434_v62, %v2560_v43  ;;  %v2639_v37 = vmul.f32 %v2446_v3, %v2557_v53  ;;  %v3565_v3 = vld [vmem:[#allocation11_spill] sm:$0xff] }
  0xf7   :  { %v1777_v32 = vpack.i.bf16 %v508_v59, %v2619_v24  ;;  %v2644_v46 = vmul.f32 %v2427_v60, %v2531_v48  ;;  %v2648_v56 = vmul.f32 %v2427_v60, %v2555_v51  ;;  %v2652_v36 = vmul.f32 %v2465_v52, %v2560_v43 }
  0xf8   :  { %1753 = vrot.lane.b32.xlu0 %v1752_v31, %s2161_s0  ;;  %v1782_v62 = vpack.i.bf16 %v2631_v25, %v2626_v15  ;;  %v2661_v48 = vmul.f32 %v2468_v5, %v2557_v53  ;;  %v2665_v60 = vmul.f32 %v2454_v4, %v2560_v43  ;;  %v2671_v51 = vmul.f32 %v2457_v35, %v2557_v53 }
  0xf9   :  { %v1787_v52 = vpack.i.bf16 %v2648_v56, %v2644_v46  ;;  %v2675_v23 = vmul.f32 %v2476_v7, %v2557_v53  ;;  %v2679_v31 = vmul.f32 %v2479_v8, %v2567_v42  ;;  %v2686_v5 = vmul.f32 %v2437_v0, %v2560_v43 }
  0xfa   :  { %1758 = vrot.lane.b32.xlu1 %v1757_v57, %s2162_s29  ;;  %v2690_v35 = vmul.f32 %v2430_v61, %v2557_v53  ;;  %v2694_v7 = vmul.f32 %v2498_v13, %v2557_v53  ;;  %v2702_v63 = vmul.f32 %v2501_v14, %v2567_v42  ;;  %v2706_v0 = vmul.f32 %v2487_v10, %v2557_v53 }
  0xfb   :  { %v2713_v13 = vmul.f32 %v2490_v11, %v2567_v42  ;;  %v2717_v57 = vmul.f32 %v2461_v44, %v2543_v20  ;;  %v2721_v29 = vmul.f32 %v2402_v33, %v2573_v38  ;;  %v2727_v58 = vmul.f32 %v2509_v18, %v2557_v53 }
  0xfc   :  { %1763 = vrot.lane.b32.xlu0 %v1762_v21, %s2163_s1  ;;  %v2731_v24 = vmul.f32 %v2512_v19, %v2567_v42  ;;  %v2735_v21 = vmul.f32 %v2440_v1, %v2543_v20  ;;  %v2744_v18 = vmul.f32 %v2443_v2, %v2573_v38  ;;  %v2748_v25 = vmul.f32 %v2522_v26, %v2560_v43 }
  0xfd   :  { %v2758_v56 = vmul.f32 %v2479_v8, %v2543_v20  ;;  %v2762_v15 = vmul.f32 %v2483_v9, %v2573_v38  ;;  %v2769_v46 = vmul.f32 %v2450_v47, %v2543_v20  ;;  %v2777_v8 = vmul.f32 %v2501_v14, %v2543_v20  ;;  %v3564_v14 = vld [vmem:[#allocation5_spill] sm:$0xff] }
  0xfe   :  { %1768 = vrot.lane.b32.xlu1 %v1767_v27, %s2157_s22  ;;  %v2754_v27 = vmul.f32 %v2529_v41, %v2557_v53  ;;  %v2773_v41 = vmul.f32 %v2396_v28, %v2573_v38  ;;  %v2785_v26 = vmul.f32 %v2505_v17, %v2573_v38  ;;  %v2789_v10 = vmul.f32 %v2472_v6, %v2543_v20 }
  0xff   :  { %3559 = vst [vmem:[#allocation12_spill] sm:$0xff] %v2758_v56  ;;  %3560 = vst [vmem:[#allocation13_spill] sm:$0xff] %v2762_v15  ;;  %v2796_v59 = vmul.f32 %v2406_v39, %v2573_v38  ;;  %v2804_v53 = vmul.f32 %v2490_v11, %v2543_v20  ;;  %v2814_v4 = vmul.f32 %v3564_v14, %v2579_v49  ;;  %v3566_v56 = vld [vmem:[#allocation9_spill] sm:$0xff]  ;;  %vm852_vm13 = vcmask 1031168  }
 0x100   :  { %1773 = vrot.lane.b32.xlu0 %v1772_v40, %s2153_s10  ;;  %3561 = vst [vmem:[#allocation14_spill] sm:$0xff] %v2769_v46  ;;  %3562 = vst [vmem:[#allocation15_spill] sm:$0xff] %v2773_v41  ;;  %v2800_v40 = vmul.f32 %v2525_v34, %v2573_v38  ;;  %v1867_v22 = vpack.i.bf16 %v2785_v26, %v2777_v8  ;;  %v2818_v16 = vmul.f32 %v2412_v45, %v2560_v43  ;;  %vm959_vm14 = vcmask 900096  }
 0x101   :  { %v1847_v11 = vpack.i.bf16 %v2796_v59, %v2789_v10  ;;  %v776_v8 = vmul.f32 %v2512_v19, %v2543_v20  ;;  %v777_v15 = vmul.f32 %v3566_v56, %v2573_v38  ;;  %v779_v10 = vmul.f32 %v2420_v55, %v2560_v43  ;;  %v3568_v19 = vld [vmem:[#allocation4_spill] sm:$0xff] }
 0x102   :  { %1778 = vrot.lane.b32.xlu1 %v1777_v32, %s2159_s5  ;;  %v3563_v32 = vld [vmem:[#allocation8_spill] sm:$0xff]  ;;  %v1877_v26 = vpack.i.bf16 %v2800_v40, %v3565_v3  ;;  %v1887_v45 = vpack.i.bf16 %v2818_v16, %v2814_v4  ;;  %v640_v20 = vmul.f32 %v3568_v19, %v2579_v49  ;;  %v512_v4 = vmul.f32 %v2402_v33, %v2593_v30  ;;  %v3570_v16 = vld [vmem:[#allocation6_spill] sm:$0xff] }
 0x103   :  { %v2810_v61 = vmul.f32 %v3563_v32, %v2573_v38  ;;  %v1872_v3 = vpack.i.bf16 %v777_v15, %v776_v8  ;;  %v3569_v38 = vld [vmem:[#allocation3_spill] sm:$0xff]  ;;  %v732_v40 = vmul.f32 %v3570_v16, %v2579_v49  ;;  %v733_v55 = vmul.f32 %v2416_v50, %v2560_v43  ;;  %v3572_v50 = vld [vmem:[#allocation10_spill] sm:$0xff] }
 0x104   :  { %1783 = vrot.lane.b32.xlu0 %v1782_v62, %s2151_s2  ;;  %v3567_v62 = vld [vmem:[#allocation7_spill] sm:$0xff]  ;;  %v641_v59 = vmul.f32 %v3569_v38, %v2560_v43  ;;  %v588_v8 = vmul.f32 %v2440_v1, %v2567_v42  ;;  %v465_v33 = vmul.f32 %v2450_v47, %v2567_v42  ;;  %v466_v43 = vmul.f32 %v2396_v28, %v2593_v30 }
 0x105   :  { %v1862_v46 = vpack.i.bf16 %v2810_v61, %v2804_v53  ;;  %v778_v41 = vmul.f32 %v3567_v62, %v2579_v49  ;;  %v511_v61 = vmul.f32 %v2461_v44, %v2567_v42  ;;  %v589_v44 = vmul.f32 %v2443_v2, %v2593_v30 }
 0x106   :  { %1788 = vrot.lane.b32.xlu1 %v1787_v52, %s2157_s22  ;;  %v3571_v52 = vpack.i.bf16 %v2639_v37, %v2635_v12  ;;  %v1882_v15 = vpack.i.bf16 %v641_v59, %v640_v20  ;;  %v1892_v49 = vpack.i.bf16 %v733_v55, %v732_v40  ;;  %v3573_v12 = vpack.i.bf16 %v2671_v51, %v2665_v60 }
 0x107   :  { %v1897_v53 = vpack.i.bf16 %v779_v10, %v778_v41  ;;  %v1907_v41 = vpack.i.bf16 %v512_v4, %v511_v61  ;;  %v419_v10 = vmul.f32 %v3572_v50, %v2567_v42  ;;  %v1917_v1 = vpack.i.bf16 %v589_v44, %v588_v8 }
 0x108   :  { %1793 = vrot.lane.b32.xlu0 %v3571_v52, %s2153_s10  ;;  %v420_v2 = vmul.f32 %v2525_v34, %v2593_v30  ;;  %v557_v47 = vmul.f32 %v2472_v6, %v2567_v42  ;;  %v558_v37 = vmul.f32 %v2406_v39, %v2593_v30  ;;  %v1902_v20 = vpack.i.bf16 %v466_v43, %v465_v33 }
 0x109   :  { %v690_v28 = vmul.f32 %v3563_v32, %v2593_v30  ;;  %v691_v38 = vmul.f32 %v3564_v14, %v2595_v54  ;;  %v644_v60 = vmul.f32 %v2483_v9, %v2593_v30  ;;  %v3574_v34 = vpack.i.bf16 %v2661_v48, %v2652_v36 }
 0x10a   :  { %1798 = vrot.lane.b32.xlu1 %v3573_v12, %s2159_s5  ;;  %v1922_v51 = vpack.i.bf16 %v420_v2, %v419_v10  ;;  %v1912_v6 = vpack.i.bf16 %v558_v37, %v557_v47  ;;  %v645_v39 = vmul.f32 %v3568_v19, %v2595_v54  ;;  %v782_v42 = vmul.f32 %v3566_v56, %v2593_v30 }
 0x10b   :  { %v1932_v32 = vpack.i.bf16 %v691_v38, %v690_v28  ;;  %v783_v14 = vmul.f32 %v3567_v62, %v2595_v54  ;;  %v736_v9 = vmul.f32 %v2505_v17, %v2593_v30  ;;  %v737_v59 = vmul.f32 %v3570_v16, %v2595_v54 }
 0x10c   :  { %1803 = vrot.lane.b32.xlu0 %v3574_v34, %s2151_s2  ;;  %v3575_v36 = vpack.i.bf16 %v2690_v35, %v2686_v5  ;;  %v1927_v48 = vpack.i.bf16 %v645_v39, %v644_v60  ;;  %v3576_v56 = vpack.i.bf16 %v2679_v31, %v2675_v23  ;;  %v3577_v17 = vpack.i.bf16 %v2713_v13, %v2706_v0  ;;  %v3583_v35 = vld [vmem:[#allocation15_spill] sm:$0xff]  ;;  %v3586_v0 = vld [vmem:[#allocation13_spill] sm:$0xff]  ;;  %v3587_v13 = vld [vmem:[#allocation12_spill] sm:$0xff] }
 0x10d   :  { %v1942_v19 = vpack.i.bf16 %v783_v14, %v782_v42  ;;  %v1937_v61 = vpack.i.bf16 %v737_v59, %v736_v9  ;;  %v3578_v30 = vpack.i.bf16 %v2702_v63, %v2694_v7  ;;  %v3579_v54 = vpack.i.bf16 %v2731_v24, %v2727_v58  ;;  %v3584_v7 = vld [vmem:[#allocation14_spill] sm:$0xff] }
 0x10e   :  { %1808 = vrot.lane.b32.xlu1 %v3575_v36, %s2158_s25  ;;  %v3580_v23 = vpack.i.bf16 %v2721_v29, %v2717_v57  ;;  %v3581_v31 = vpack.i.bf16 %v2754_v27, %v2748_v25  ;;  %v3582_v5 = vpack.i.bf16 %v2744_v18, %v2735_v21  ;;  %v3585_v63 = vpack.i.bf16 %v3583_v35, %v3584_v7 }
 0x10f   :  { %v3588_v57 = vpack.i.bf16 %v3586_v0, %v3587_v13  ;;  %vm998_vm15 = vcmask 785408  }
 0x110   :  { %1813 = vrot.lane.b32.xlu0 %v3576_v56, %s2160_s28 }
 0x112   :  { %1818 = vrot.lane.b32.xlu1 %v3577_v17, %s2161_s0 }
 0x114   :  { %1823 = vrot.lane.b32.xlu0 %v3578_v30, %s2162_s29 }
 0x116   :  { %1828 = vrot.lane.b32.xlu1 %v3579_v54, %s2163_s1 }
 0x118   :  { %1843 = vrot.lane.b32.xlu0 %v3580_v23, %s2159_s5 }
 0x11a   :  { %1833 = vrot.lane.b32.xlu1 %v3581_v31, %s2157_s22 }
 0x11c   :  { %1853 = vrot.lane.b32.xlu0 %v3582_v5, %s2158_s25 }
 0x11e   :  { %1838 = vrot.lane.b32.xlu1 %v3585_v63, %s2153_s10 }
 0x120   :  { %1858 = vrot.lane.b32.xlu0 %v3588_v57, %s2160_s28 }
 0x122   :  { %1848 = vrot.lane.b32.xlu1 %v1847_v11, %s2151_s2 }
 0x124   :  { %1868 = vrot.lane.b32.xlu0 %v1867_v22, %s2162_s29 }
 0x126   :  { %1863 = vrot.lane.b32.xlu1 %v1862_v46, %s2161_s0 }
 0x128   :  { %1878 = vrot.lane.b32.xlu0 %v1877_v26, %s2157_s22 }
 0x12a   :  { %1873 = vrot.lane.b32.xlu1 %v1872_v3, %s2163_s1 }
 0x12c   :  { %1888 = vrot.lane.b32.xlu0 %v1887_v45, %s2161_s0 }
 0x12e   :  { %1883 = vrot.lane.b32.xlu1 %v1882_v15, %s2160_s28 }
 0x130   :  { %1898 = vrot.lane.b32.xlu0 %v1897_v53, %s2163_s1 }
 0x132   :  { %1893 = vrot.lane.b32.xlu1 %v1892_v49, %s2162_s29 }
 0x134   :  { %1908 = vrot.lane.b32.xlu0 %v1907_v41, %s2159_s5 }
 0x136   :  { %1903 = vrot.lane.b32.xlu1 %v1902_v20, %s2153_s10 }
 0x138   :  { %1918 = vrot.lane.b32.xlu0 %v1917_v1, %s2158_s25 }
 0x13a   :  { %1913 = vrot.lane.b32.xlu1 %v1912_v6, %s2151_s2 }
 0x13c   :  { %1923 = vrot.lane.b32.xlu0 %v1922_v51, %s2157_s22 }
 0x13e   :  { %1928 = vrot.lane.b32.xlu1 %v1927_v48, %s2160_s28 }
 0x140   :  { %1933 = vrot.lane.b32.xlu0 %v1932_v32, %s2161_s0 }
 0x142   :  { %1938 = vrot.lane.b32.xlu1 %v1937_v61, %s2162_s29 }
 0x144   :  { %1943 = vrot.lane.b32.xlu0 %v1942_v19, %s2163_s1 }
 0x160   :  { %v2952_v22 = vpop.permute.xlu1 %1733 }
 0x161   :  { %v1736_v15 = vunpack.i.h.bf16 %v2952_v22  ;;  %v1735_v8 = vunpack.i.l.bf16 %v2952_v22 }
 0x162   :  { %v2954_v29 = vpop.permute.xlu0 %1728 }
 0x163   :  { %v854_v2 = vsel %vm852_vm13, %v1735_v8, %v1736_v15  ;;  %v1731_v38 = vunpack.i.h.bf16 %v2954_v29  ;;  %v1730_v60 = vunpack.i.l.bf16 %v2954_v29 }
 0x164   :  { %v2956_v58 = vpop.permute.xlu1 %1743 }
 0x165   :  { %v1746_v10 = vunpack.i.h.bf16 %v2956_v58  ;;  %v1745_v12 = vunpack.i.l.bf16 %v2956_v58  ;;  %v815_v23 = vsel %vm540_vm6, %v1730_v60, %v1731_v38 }
 0x166   :  { %v2958_v24 = vpop.permute.xlu0 %1738 }
 0x167   :  { %v923_v19 = vsel %vm402_vm11, %v1745_v12, %v1746_v10  ;;  %v1741_v30 = vunpack.i.h.bf16 %v2958_v24  ;;  %v1740_v54 = vunpack.i.l.bf16 %v2958_v24 }
 0x168   :  { %v2960_v21 = vpop.permute.xlu1 %1748 }
 0x169   :  { %v1751_v0 = vunpack.i.h.bf16 %v2960_v21  ;;  %v1750_v13 = vunpack.i.l.bf16 %v2960_v21 }
 0x16a   :  { %v2962_v18 = vpop.permute.xlu0 %1753 }
 0x16b   :  { %v1756_v58 = vunpack.i.h.bf16 %v2962_v18 }
 0x16c   :  { %v2964_v25 = vpop.permute.xlu1 %1758 }
 0x16e   :  { %v2966_v46 = vpop.permute.xlu0 %1763 }
 0x170   :  { %v2968_v27 = vpop.permute.xlu1 %1768 }
 0x171   :  { %v1771_v33 = vunpack.i.h.bf16 %v2968_v27  ;;  %v1770_v41 = vunpack.i.l.bf16 %v2968_v27 }
 0x172   :  { %v2970_v11 = vpop.permute.xlu0 %1773 }
 0x173   :  { %v1285_v6 = vsel %vm765_vm10, %v1770_v41, %v1771_v33 }
 0x174   :  { %v2972_v26 = vpop.permute.xlu1 %1778 }
 0x176   :  { %v2974_v45 = vpop.permute.xlu0 %1783 }
 0x178   :  { %v1789_v62 = vpop.permute.xlu1 %1788 }
 0x179   :  { %v1790_v43 = vunpack.i.l.bf16 %v1789_v62  ;;  %v1791_v47 = vunpack.i.h.bf16 %v1789_v62  ;;  %v3545_v62 = vunpack.i.l.bf16 %v2962_v18 }
 0x17a   :  { %v2976_v3 = vpop.permute.xlu0 %1793 }
 0x17b   :  { %v1284_v39 = vsel %vm765_vm10, %v1790_v43, %v1770_v41 }
 0x17c   :  { %v2978_v53 = vpop.permute.xlu1 %1798 }
 0x17e   :  { %v2980_v4 = vpop.permute.xlu0 %1803 }
 0x180   :  { %v2982_v16 = vpop.permute.xlu1 %1808 }
 0x182   :  { %v2984_v40 = vpop.permute.xlu0 %1813 }
 0x184   :  { %v2986_v55 = vpop.permute.xlu1 %1818 }
 0x185   :  { %v1821_v29 = vunpack.i.h.bf16 %v2986_v55 }
 0x186   :  { %v2988_v52 = vpop.permute.xlu0 %1823 }
 0x188   :  { %v2992_v44 = vpop.permute.xlu1 %1828 }
 0x18a   :  { %v2996_v49 = vpop.permute.xlu0 %1843 }
 0x18b   :  { %v1845_v50 = vunpack.i.l.bf16 %v2996_v49 }
 0x18c   :  { %v3001_v1 = vpop.permute.xlu1 %1833 }
 0x18d   :  { %v1836_v37 = vunpack.i.h.bf16 %v3001_v1  ;;  %v1835_v20 = vunpack.i.l.bf16 %v3001_v1  ;;  %v855_v28 = vsel %vm852_vm13, %v1736_v15, %v1845_v50  ;;  %v892_v15 = vsel %vm448_vm4, %v1740_v54, %v1741_v30 }
 0x18e   :  { %v3013_v34 = vpop.permute.xlu0 %1853  ;;  %v1952_v51 = vpack.i.bf16 %v855_v28, %v854_v2 }
 0x18f   :  { %v1855_v42 = vunpack.i.l.bf16 %v3013_v34  ;;  %v1288_v32 = vsel %vm765_vm10, %v1791_v47, %v1835_v20  ;;  %v1289_v14 = vsel %vm765_vm10, %v1835_v20, %v1836_v37  ;;  %v999_v20 = vsel %vm998_vm15, %v3545_v62, %v1756_v58 }
 0x190   :  { %v1640_v9 = vpack.c.bf16 %v1288_v32, %v1284_v39  ;;  %1953 = vrot.lane.b32.xlu1 %v1952_v51, %s2157_s22  ;;  %v3025_v59 = vpop.permute.xlu1 %1838  ;;  %v1638_v36 = vpack.c.bf16 %v1289_v14, %v1285_v6  ;;  %v1810_v51 = vunpack.i.l.bf16 %v2982_v16 }
 0x191   :  { %v1840_v48 = vunpack.i.l.bf16 %v3025_v59  ;;  %v924_v61 = vsel %vm402_vm11, %v1746_v10, %v1855_v42 }
 0x192   :  { %v3032_v56 = vpop.permute.xlu0 %1858  ;;  %v1962_v17 = vpack.i.bf16 %v924_v61, %v923_v19  ;;  %1639 = vmatprep.subr.bf16.mxu1 %v1638_v36 }
 0x193   :  { %1641 = vmatpush1.bf16.msra.mxu1 %v1640_v9  ;;  %v816_v31 = vsel %vm540_vm6, %v1731_v38, %v1840_v48  ;;  %v1860_v7 = vunpack.i.l.bf16 %v3032_v56  ;;  %v960_v38 = vsel %vm959_vm14, %v1750_v13, %v1751_v0  ;;  %v1977_v9 = vpack.i.bf16 %v1810_v51, %v1745_v12 }
 0x194   :  { %1963 = vrot.lane.b32.xlu1 %v1962_v17, %s2157_s22  ;;  %v3043_v5 = vpop.permute.xlu1 %1848  ;;  %v1947_v35 = vpack.i.bf16 %v816_v31, %v815_v23  ;;  %v1801_v23 = vunpack.i.h.bf16 %v2978_v53  ;;  %v1800_v31 = vunpack.i.l.bf16 %v2978_v53  ;;  %v1780_v53 = vunpack.i.l.bf16 %v2972_v26 }
 0x195   :  { %v1850_v63 = vunpack.i.l.bf16 %v3043_v5  ;;  %v961_v2 = vsel %vm959_vm14, %v1751_v0, %v1860_v7  ;;  %v1795_v0 = vunpack.i.l.bf16 %v2976_v3 }
 0x196   :  { %v3049_v57 = vpop.permute.xlu0 %1868  ;;  %1948 = vrot.lane.b32.xlu0 %v1947_v35, %s2157_s22  ;;  %v1967_v32 = vpack.i.bf16 %v961_v2, %v960_v38  ;;  %v1796_v35 = vunpack.i.h.bf16 %v2976_v3  ;;  %v1781_v2 = vunpack.i.h.bf16 %v2972_v26 }
 0x197   :  { %v893_v41 = vsel %vm448_vm4, %v1741_v30, %v1850_v63 }
 0x198   :  { %v3060_v43 = vpop.permute.xlu1 %1863  ;;  %v1957_v21 = vpack.i.bf16 %v893_v41, %v892_v15  ;;  %v1775_v41 = vunpack.i.l.bf16 %v2970_v11  ;;  %v857_v62 = vsel %vm852_vm13, %v1781_v2, %v1800_v31  ;;  %v1805_v2 = vunpack.i.l.bf16 %v2980_v4 }
 0x199   :  { %v3546_v10 = vunpack.i.l.bf16 %v3060_v43 }
 0x19a   :  { %v3066_v47 = vpop.permute.xlu0 %1878  ;;  %1958 = vrot.lane.b32.xlu0 %v1957_v21, %s2157_s22 }
 0x19b   :  { %v1000_v28 = vsel %vm998_vm15, %v1756_v58, %v3546_v10  ;;  %v1881_v10 = vunpack.i.h.bf16 %v3066_v47 }
 0x19c   :  { %v3077_v6 = vpop.permute.xlu1 %1873  ;;  %v1972_v39 = vpack.i.bf16 %v1000_v28, %v999_v20  ;;  %v858_v28 = vsel %vm852_vm13, %v1800_v31, %v1801_v23  ;;  %v853_v31 = vsel %vm852_vm13, %v1780_v53, %v1735_v8 }
 0x19e   :  { %v3079_v14 = vpop.permute.xlu0 %1888  ;;  %1973 = vrot.lane.b32.xlu1 %v1972_v39, %s2157_s22  ;;  %1968 = vrot.lane.b32.xlu0 %v1967_v32, %s2157_s22  ;;  %v819_v39 = vsel %vm540_vm6, %v1795_v0, %v1796_v35 }
 0x1a0   :  { %v3083_v36 = vpop.permute.xlu1 %1883 }
 0x1a1   :  { %v1886_v19 = vunpack.i.h.bf16 %v3083_v36 }
 0x1a2   :  { %v3086_v61 = vpop.permute.xlu0 %1898  ;;  %1978 = vrot.lane.b32.xlu1 %v1977_v9, %s2157_s22 }
 0x1a3   :  { %v1982_v17 = vpack.i.bf16 %v1886_v19, %v1750_v13  ;;  %v1776_v13 = vunpack.i.h.bf16 %v2970_v11  ;;  %v1811_v11 = vunpack.i.h.bf16 %v2982_v16  ;;  %v814_v16 = vsel %vm540_vm6, %v1775_v41, %v1730_v60 }
 0x1a4   :  { %v3091_v30 = vpop.permute.xlu1 %1893  ;;  %v1891_v60 = vunpack.i.h.bf16 %v3079_v14 }
 0x1a5   :  { %1983 = vrot.lane.b32.xlu0 %v1982_v17, %s2157_s22  ;;  %v818_v32 = vsel %vm540_vm6, %v1776_v13, %v1795_v0  ;;  %v1806_v0 = vunpack.i.h.bf16 %v2980_v4  ;;  %v926_v41 = vsel %vm402_vm11, %v1810_v51, %v1811_v11  ;;  %v1820_v51 = vunpack.i.l.bf16 %v2986_v55 }
 0x1a6   :  { %v3096_v12 = vpop.permute.xlu0 %1908 }
 0x1a7   :  { %v3547_v58 = vunpack.i.l.bf16 %v3096_v12 }
 0x1a8   :  { %v3101_v15 = vpop.permute.xlu1 %1903 }
 0x1a9   :  { %v1905_v21 = vunpack.i.l.bf16 %v3101_v15  ;;  %v859_v3 = vsel %vm852_vm13, %v1801_v23, %v3547_v58  ;;  %v1880_v23 = vunpack.i.l.bf16 %v3066_v47 }
 0x1aa   :  { %v3108_v20 = vpop.permute.xlu0 %1918  ;;  %v1997_v38 = vpack.i.bf16 %v859_v3, %v858_v28 }
 0x1ab   :  { %v1920_v9 = vunpack.i.l.bf16 %v3108_v20  ;;  %v820_v26 = vsel %vm540_vm6, %v1796_v35, %v1905_v21  ;;  %v1992_v35 = vpack.i.bf16 %v818_v32, %v814_v16  ;;  %v1286_v8 = vsel %vm765_vm10, %v1771_v33, %v1880_v23 }
 0x1ac   :  { %v3118_v17 = vpop.permute.xlu1 %1913  ;;  %1998 = vrot.lane.b32.xlu1 %v1997_v38, %s2157_s22  ;;  %v1987_v28 = vpack.i.bf16 %v820_v26, %v819_v39  ;;  %v2002_v38 = vpack.i.bf16 %v857_v62, %v853_v31  ;;  %v1287_v62 = vsel %vm765_vm10, %v1880_v23, %v1881_v10  ;;  %v1785_v33 = vunpack.i.l.bf16 %v2974_v45 }
 0x1ad   :  { %v1915_v3 = vunpack.i.l.bf16 %v3118_v17  ;;  %v927_v22 = vsel %vm402_vm11, %v1811_v11, %v1920_v9  ;;  %v1841_v11 = vunpack.i.h.bf16 %v3025_v59  ;;  %v896_v10 = vsel %vm448_vm4, %v1805_v2, %v1806_v0 }
 0x1ae   :  { %v1924_v13 = vpop.permute.xlu0 %1923  ;;  %1988 = vrot.lane.b32.xlu0 %v1987_v28, %s2157_s22  ;;  %v2017_v1 = vpack.i.bf16 %v927_v22, %v926_v41  ;;  %v1004_v23 = vsel %vm998_vm15, %v1820_v51, %v1821_v29  ;;  %v891_v16 = vsel %vm448_vm4, %v1785_v33, %v1740_v54  ;;  %v1856_v22 = vunpack.i.h.bf16 %v3013_v34 }
 0x1af   :  { %v1926_v47 = vunpack.i.h.bf16 %v1924_v13  ;;  %v1925_v58 = vunpack.i.l.bf16 %v1924_v13  ;;  %v897_v27 = vsel %vm448_vm4, %v1806_v0, %v1915_v3  ;;  %v1816_v0 = vunpack.i.h.bf16 %v2984_v40 }
 0x1b0   :  { %2003 = vrot.lane.b32.xlu1 %v2002_v38, %s2157_s22  ;;  %v2007_v26 = vpack.i.bf16 %v897_v27, %v896_v10  ;;  %v1815_v13 = vunpack.i.l.bf16 %v2984_v40  ;;  %v817_v31 = vsel %vm540_vm6, %v1840_v48, %v1841_v11  ;;  %v1885_v48 = vunpack.i.l.bf16 %v3083_v36 }
 0x1b1   :  { %v1290_v4 = vsel %vm765_vm10, %v1836_v37, %v1925_v58  ;;  %v1291_v53 = vsel %vm765_vm10, %v1925_v58, %v1926_v47  ;;  %v1786_v37 = vunpack.i.h.bf16 %v2974_v45  ;;  %v1003_v58 = vsel %vm998_vm15, %v1891_v60, %v1820_v51 }
 0x1b2   :  { %v1676_v39 = vpack.c.bf16 %v1290_v4, %v1286_v8  ;;  %v1674_v32 = vpack.c.bf16 %v1291_v53, %v1287_v62  ;;  %1993 = vrot.lane.b32.xlu0 %v1992_v35, %s2157_s22  ;;  %v2027_v45 = vpack.i.bf16 %v1004_v23, %v1003_v58  ;;  %v1851_v35 = vunpack.i.h.bf16 %v3043_v5 }
 0x1b3   :  { %v895_v28 = vsel %vm448_vm4, %v1786_v37, %v1805_v2  ;;  %v1846_v47 = vunpack.i.h.bf16 %v2996_v49  ;;  %v964_v24 = vsel %vm959_vm14, %v1886_v19, %v1815_v13  ;;  %v2032_v54 = vpack.i.bf16 %v1841_v11, %v817_v31 }
 0x1b4   :  { %1675 = vmatprep.subr.bf16.mxu0 %v1674_v32  ;;  %2018 = vrot.lane.b32.xlu1 %v2017_v1, %s2157_s22  ;;  %v2012_v2 = vpack.i.bf16 %v895_v28, %v891_v16  ;;  %v894_v59 = vsel %vm448_vm4, %v1850_v63, %v1851_v35  ;;  %v965_v38 = vsel %vm959_vm14, %v1815_v13, %v1816_v0  ;;  %v1861_v8 = vunpack.i.h.bf16 %v3032_v56  ;;  %v1929_v28 = vpop.permute.xlu1 %1928 }
 0x1b5   :  { %1677 = vmatpush1.bf16.msra.mxu0 %v1676_v39  ;;  %v2022_v41 = vpack.i.bf16 %v965_v38, %v964_v24  ;;  %v856_v19 = vsel %vm852_vm13, %v1845_v50, %v1846_v47  ;;  %v2042_v5 = vpack.i.bf16 %v1851_v35, %v894_v59  ;;  %v1906_v36 = vunpack.i.h.bf16 %v3101_v15 }
 0x1b6   :  { %2008 = vrot.lane.b32.xlu0 %v2007_v26, %s2157_s22  ;;  %v963_v63 = vsel %vm959_vm14, %v1861_v8, %v1885_v48  ;;  %v2037_v4 = vpack.i.bf16 %v1846_v47, %v856_v19  ;;  %v925_v49 = vsel %vm402_vm11, %v1855_v42, %v1856_v22  ;;  %v962_v50 = vsel %vm959_vm14, %v1860_v7, %v1861_v8  ;;  %v1934_v8 = vpop.permute.xlu0 %1933 }
 0x1b7   :  { %v1890_v62 = vunpack.i.l.bf16 %v3079_v14  ;;  %v2052_v53 = vpack.i.bf16 %v963_v63, %v962_v50  ;;  %v1866_v51 = vunpack.i.h.bf16 %v3060_v43  ;;  %v821_v39 = vsel %vm540_vm6, %v1905_v21, %v1906_v36 }
 0x1b8   :  { %2028 = vrot.lane.b32.xlu1 %v2027_v45, %s2157_s22  ;;  %v2047_v32 = vpack.i.bf16 %v1856_v22, %v925_v49  ;;  %v1870_v34 = vunpack.i.l.bf16 %v3049_v57  ;;  %v2062_v56 = vpack.i.bf16 %v1906_v36, %v821_v39  ;;  %v1761_v7 = vunpack.i.h.bf16 %v2964_v25  ;;  %v1939_v38 = vpop.permute.xlu1 %1938 }
 0x1b9   :  { %v1002_v42 = vsel %vm998_vm15, %v1866_v51, %v1890_v62  ;;  %v1760_v27 = vunpack.i.l.bf16 %v2964_v25  ;;  %v3589_v33 = vunpack.i.l.bf16 %v3060_v43  ;;  %v1916_v21 = vunpack.i.h.bf16 %v3118_v17 }
 0x1ba   :  { %2013 = vrot.lane.b32.xlu0 %v2012_v2, %s2157_s22  ;;  %vm1037_vm6 = vcmask 777216   ;;  %v1911_v11 = vunpack.i.h.bf16 %v3096_v12  ;;  %v3590_v10 = vunpack.i.l.bf16 %v2962_v18  ;;  %v1895_v43 = vunpack.i.l.bf16 %v3091_v30 }
 0x1bb   :  { %v1001_v15 = vsel %vm998_vm15, %v3589_v33, %v1866_v51  ;;  %v1039_v37 = vsel %vm1037_vm6, %v1761_v7, %v1870_v34  ;;  %v1038_v25 = vsel %vm1037_vm6, %v1760_v27, %v1761_v7  ;;  %v898_v26 = vsel %vm448_vm4, %v1915_v3, %v1916_v21 }
 0x1bc   :  { %2033 = vrot.lane.b32.xlu1 %v2032_v54, %s2157_s22  ;;  %v2057_v1 = vpack.i.bf16 %v1002_v42, %v1001_v15  ;;  %v2067_v58 = vpack.i.bf16 %v1891_v60, %v3590_v10  ;;  %v2072_v23 = vpack.i.bf16 %v1039_v37, %v1038_v25  ;;  %v1871_v45 = vunpack.i.h.bf16 %v3049_v57 }
 0x1bd   :  { %v3591_v18 = vunpack.i.l.bf16 %v3096_v12  ;;  %v1896_v60 = vunpack.i.h.bf16 %v3091_v30  ;;  %v1826_v16 = vunpack.i.h.bf16 %v2988_v52  ;;  %v2082_v13 = vpack.i.bf16 %v1916_v21, %v898_v26  ;;  %v1086_v26 = vld [vmem:[%s3527_s4] sm:$0x7] }
 0x1be   :  { %2023 = vrot.lane.b32.xlu0 %v2022_v41, %s2157_s22  ;;  %v1825_v17 = vunpack.i.l.bf16 %v2988_v52  ;;  %v1041_v3 = vsel %vm1037_vm6, %v1871_v45, %v1895_v43  ;;  %v1931_v31 = vunpack.i.h.bf16 %v1929_v28  ;;  %v1930_v35 = vunpack.i.l.bf16 %v1929_v28 }
 0x1bf   :  { %v860_v14 = vsel %vm852_vm13, %v3591_v18, %v1911_v11  ;;  %v1040_v57 = vsel %vm1037_vm6, %v1870_v34, %v1871_v45  ;;  %v1921_v30 = vunpack.i.h.bf16 %v3108_v20  ;;  %v1875_v52 = vunpack.i.l.bf16 %v3077_v6 }
 0x1c0   :  { %2043 = vrot.lane.b32.xlu1 %v2042_v5, %s2157_s22  ;;  %v2077_v2 = vpack.i.bf16 %v1911_v11, %v860_v14  ;;  %v1042_v12 = vsel %vm1037_vm6, %v1896_v60, %v1825_v17  ;;  %v2087_v47 = vpack.i.bf16 %v1041_v3, %v1040_v57  ;;  %v1043_v24 = vsel %vm1037_vm6, %v1825_v17, %v1826_v16 }
 0x1c1   :  { %v966_v54 = vsel %vm959_vm14, %v1816_v0, %v1930_v35  ;;  %v967_v59 = vsel %vm959_vm14, %v1930_v35, %v1931_v31  ;;  %v2092_v48 = vpack.i.bf16 %v1043_v24, %v1042_v12  ;;  %v1766_v41 = vunpack.i.h.bf16 %v2966_v46 }
 0x1c2   :  { %2038 = vrot.lane.b32.xlu0 %v2037_v4, %s2157_s22  ;;  %v1765_v19 = vunpack.i.l.bf16 %v2966_v46  ;;  %v928_v22 = vsel %vm402_vm11, %v1920_v9, %v1921_v30  ;;  %vm1076_vm4 = vcmask 769024   ;;  %v2107_v5 = vpack.i.bf16 %v967_v59, %v966_v54 }
 0x1c3   :  { %v1078_v40 = vsel %vm1076_vm4, %v1766_v41, %v1875_v52  ;;  %v1941_v0 = vunpack.i.h.bf16 %v1939_v38  ;;  %v1940_v63 = vunpack.i.l.bf16 %v1939_v38  ;;  %v2097_v36 = vpack.i.bf16 %v1921_v30, %v928_v22 }
 0x1c4   :  { %2053 = vrot.lane.b32.xlu1 %v2052_v53, %s2157_s22  ;;  %v1077_v4 = vsel %vm1076_vm4, %v1765_v19, %v1766_v41  ;;  %v1936_v49 = vunpack.i.h.bf16 %v1934_v8  ;;  %v1935_v46 = vunpack.i.l.bf16 %v1934_v8  ;;  %v1901_v20 = vunpack.i.h.bf16 %v3086_v61 }
 0x1c5   :  { %v2112_v50 = vpack.i.bf16 %v1078_v40, %v1077_v4  ;;  %v1044_v9 = vsel %vm1037_vm6, %v1826_v16, %v1940_v63  ;;  %v1045_v62 = vsel %vm1037_vm6, %v1940_v63, %v1941_v0  ;;  %v1831_v53 = vunpack.i.h.bf16 %v2992_v44 }
 0x1c6   :  { %2048 = vrot.lane.b32.xlu0 %v2047_v32, %s2157_s22  ;;  %v2102_v51 = vpack.i.bf16 %v1896_v60, %v1760_v27  ;;  %v1830_v39 = vunpack.i.l.bf16 %v2992_v44  ;;  %v1900_v32 = vunpack.i.l.bf16 %v3086_v61  ;;  %v1005_v34 = vsel %vm998_vm15, %v1821_v29, %v1935_v46  ;;  %v3289_v29 = vld [vmem:[%s3526_s3] sm:$0x77] }
 0x1c7   :  { %v1006_v42 = vsel %vm998_vm15, %v1935_v46, %v1936_v49  ;;  %v2127_v7 = vpack.i.bf16 %v1045_v62, %v1044_v9  ;;  %v1876_v33 = vunpack.i.h.bf16 %v3077_v6  ;;  %v1093_v6 = vcombine.high %v3289_v29, %v3289_v29 }
 0x1c8   :  { %2063 = vrot.lane.b32.xlu1 %v2062_v56, %s2157_s22  ;;  %v1944_v56 = vpop.permute.xlu0 %1943  ;;  %v1081_v27 = vsel %vm1076_vm4, %v1901_v20, %v1830_v39  ;;  %v2117_v15 = vpack.i.bf16 %v1006_v42, %v1005_v34  ;;  %v1082_v44 = vsel %vm1076_vm4, %v1830_v39, %v1831_v53  ;;  %v2142_v25 = vpack.i.bf16 %v1901_v20, %v1765_v19 }
 0x1c9   :  { %v1080_v61 = vsel %vm1076_vm4, %v1876_v33, %v1900_v32  ;;  %v1946_v55 = vunpack.i.h.bf16 %v1944_v56  ;;  %v1945_v21 = vunpack.i.l.bf16 %v1944_v56  ;;  %v1079_v37 = vsel %vm1076_vm4, %v1875_v52, %v1876_v33  ;;  %1606 = vmatprep.mubr.msk.f32.mxu1 %vm719_vm9, %v1093_v6  ;;  %1607 = vmatprep.mubr.msk.f32.mxu0 %vm719_vm9, %v1093_v6 }
 0x1ca   :  { %2058 = vrot.lane.b32.xlu0 %v2057_v1, %s2157_s22  ;;  %v2132_v1 = vpack.i.bf16 %v1082_v44, %v1081_v27  ;;  %v2122_v11 = vpack.i.bf16 %v1080_v61, %v1079_v37 }
 0x1cb   :  { %v1083_v10 = vsel %vm1076_vm4, %v1831_v53, %v1945_v21 }
 0x1cc   :  { %2068 = vrot.lane.b32.xlu1 %v2067_v58, %s2157_s22  ;;  %v1084_v58 = vsel %vm1076_vm4, %v1945_v21, %v1946_v55 }
 0x1cd   :  { %v2137_v43 = vpack.i.bf16 %v1084_v58, %v1083_v10 }
 0x1ce   :  { %2073 = vrot.lane.b32.xlu0 %v2072_v23, %s2157_s22 }
 0x1d0   :  { %2083 = vrot.lane.b32.xlu1 %v2082_v13, %s2157_s22 }
 0x1d2   :  { %2078 = vrot.lane.b32.xlu0 %v2077_v2, %s2157_s22 }
 0x1d4   :  { %2088 = vrot.lane.b32.xlu1 %v2087_v47, %s2157_s22 }
 0x1d6   :  { %2093 = vrot.lane.b32.xlu0 %v2092_v48, %s2157_s22 }
 0x1d8   :  { %2108 = vrot.lane.b32.xlu1 %v2107_v5, %s2157_s22 }
 0x1da   :  { %2098 = vrot.lane.b32.xlu0 %v2097_v36, %s2157_s22 }
 0x1dc   :  { %2113 = vrot.lane.b32.xlu1 %v2112_v50, %s2157_s22 }
 0x1de   :  { %2103 = vrot.lane.b32.xlu0 %v2102_v51, %s2157_s22 }
 0x1e0   :  { %2128 = vrot.lane.b32.xlu1 %v2127_v7, %s2157_s22 }
 0x1e2   :  { %2118 = vrot.lane.b32.xlu0 %v2117_v15, %s2157_s22 }
 0x1e4   :  { %2133 = vrot.lane.b32.xlu1 %v2132_v1, %s2157_s22 }
 0x1e6   :  { %2123 = vrot.lane.b32.xlu0 %v2122_v11, %s2157_s22 }
 0x1e8   :  { %2143 = vrot.lane.b32.xlu1 %v2142_v25, %s2157_s22 }
 0x1ea   :  { %2138 = vrot.lane.b32.xlu0 %v2137_v43, %s2157_s22 }
 0x1ee   :  { %1089 = vperm.xlu0 %1726, %v1086_v26  }
 0x202   :  { %v3306_v23 = vpop.permute.xlu1 %1953 }
 0x203   :  { %v1956_v47 = vunpack.i.h.bf16 %v3306_v23  ;;  %v1955_v24 = vunpack.i.l.bf16 %v3306_v23 }
 0x205   :  { %v1301_v0 = vsel %vm765_vm10, %v1955_v24, %v1956_v47 }
 0x206   :  { %v3310_v45 = vpop.permute.xlu1 %1963 }
 0x207   :  { %v1966_v7 = vunpack.i.h.bf16 %v3310_v45  ;;  %v1965_v33 = vunpack.i.l.bf16 %v3310_v45 }
 0x208   :  { %v3308_v28 = vpop.permute.xlu0 %1948 }
 0x209   :  { %v1951_v3 = vunpack.i.h.bf16 %v3308_v28  ;;  %v1950_v31 = vunpack.i.l.bf16 %v3308_v28 }
 0x20b   :  { %v1293_v54 = vsel %vm765_vm10, %v1950_v31, %v1951_v3 }
 0x20c   :  { %v3312_v18 = vpop.permute.xlu0 %1958 }
 0x20d   :  { %v1961_v63 = vunpack.i.h.bf16 %v3312_v18  ;;  %v1960_v36 = vunpack.i.l.bf16 %v3312_v18 }
 0x20f   :  { %v1309_v42 = vsel %vm765_vm10, %v1960_v36, %v1961_v63 }
 0x210   :  { %v3314_v14 = vpop.permute.xlu1 %1973  ;;  %v3316_v60 = vpop.permute.xlu0 %1968 }
 0x211   :  { %v1971_v21 = vunpack.i.h.bf16 %v3316_v60  ;;  %v1970_v1 = vunpack.i.l.bf16 %v3316_v60 }
 0x214   :  { %v3318_v16 = vpop.permute.xlu1 %1978 }
 0x215   :  { %v1981_v11 = vunpack.i.h.bf16 %v3318_v16  ;;  %v1980_v10 = vunpack.i.l.bf16 %v3318_v16 }
 0x217   :  { %v3320_v13 = vpop.permute.xlu0 %1983 }
 0x21e   :  { %v3322_v17 = vpop.permute.xlu1 %1998 }
 0x21f   :  { %v2001_v35 = vunpack.i.h.bf16 %v3322_v17  ;;  %v2000_v2 = vunpack.i.l.bf16 %v3322_v17 }
 0x220   :  { %v3328_v57 = vpop.permute.xlu0 %1988 }
 0x221   :  { %v1991_v12 = vunpack.i.h.bf16 %v3328_v57  ;;  %v1990_v30 = vunpack.i.l.bf16 %v3328_v57  ;;  %v1305_v41 = vsel %vm765_vm10, %v2000_v2, %v2001_v35 }
 0x222   :  { %v2004_v52 = vpop.permute.xlu1 %2003  ;;  %v1646_v20 = vpack.c.bf16 %v1305_v41, %v1301_v0  ;;  %v1986_v41 = vunpack.i.h.bf16 %v3320_v13 }
 0x223   :  { %v1297_v59 = vsel %vm765_vm10, %v1990_v30, %v1991_v12  ;;  %v2006_v19 = vunpack.i.h.bf16 %v2004_v52  ;;  %v2005_v22 = vunpack.i.l.bf16 %v2004_v52 }
 0x224   :  { %v1994_v48 = vpop.permute.xlu0 %1993  ;;  %v1642_v38 = vpack.c.bf16 %v1297_v59, %v1293_v54 }
 0x225   :  { %v1996_v8 = vunpack.i.h.bf16 %v1994_v48  ;;  %v1995_v5 = vunpack.i.l.bf16 %v1994_v48  ;;  %v1304_v9 = vsel %vm765_vm10, %v2006_v19, %v2000_v2  ;;  %v1300_v62 = vsel %vm765_vm10, %v2005_v22, %v1955_v24 }
 0x226   :  { %v3343_v40 = vpop.permute.xlu1 %2018  ;;  %1643 = vmatprep.subr.bf16.mxu1 %v1642_v38  ;;  %v1648_v27 = vpack.c.bf16 %v1304_v9, %v1300_v62  ;;  %v1325_v48 = vsel %vm765_vm10, %v1970_v1, %v1971_v21  ;;  %v1316_v38 = vsel %vm765_vm10, %v1980_v10, %v1965_v33  ;;  %v1985_v19 = vunpack.i.l.bf16 %v3320_v13 }
 0x227   :  { %v1292_v4 = vsel %vm765_vm10, %v1995_v5, %v1950_v31  ;;  %v1296_v49 = vsel %vm765_vm10, %v1996_v8, %v1990_v30  ;;  %v2021_v39 = vunpack.i.h.bf16 %v3343_v40  ;;  %v2020_v32 = vunpack.i.l.bf16 %v3343_v40 }
 0x228   :  { %v1644_v46 = vpack.c.bf16 %v1296_v49, %v1292_v4  ;;  %v3352_v50 = vpop.permute.xlu0 %2008  ;;  %v1317_v31 = vsel %vm765_vm10, %v1965_v33, %v1966_v7  ;;  %v1976_v8 = vunpack.i.h.bf16 %v3314_v14  ;;  %v1975_v5 = vunpack.i.l.bf16 %v3314_v14 }
 0x229   :  { %v2011_v53 = vunpack.i.h.bf16 %v3352_v50  ;;  %v2010_v51 = vunpack.i.l.bf16 %v3352_v50  ;;  %v1321_v37 = vsel %vm765_vm10, %v2020_v32, %v2021_v39  ;;  %v1320_v2 = vsel %vm765_vm10, %v1981_v11, %v2020_v32 }
 0x22a   :  { %v3360_v34 = vpop.permute.xlu1 %2028  ;;  %1645 = vmatpush1.bf16.msra.mxu1 %v1644_v46  ;;  %v1654_v52 = vpack.c.bf16 %v1321_v37, %v1317_v31  ;;  %v1656_v0 = vpack.c.bf16 %v1320_v2, %v1316_v38 }
 0x22b   :  { %1647 = vmatprep.subr.bf16.mxu1 %v1646_v20  ;;  %v1313_v56 = vsel %vm765_vm10, %v2010_v51, %v2011_v53  ;;  %v2031_v16 = vunpack.i.h.bf16 %v3360_v34  ;;  %v2030_v54 = vunpack.i.l.bf16 %v3360_v34  ;;  %v1324_v20 = vsel %vm765_vm10, %v1985_v19, %v1970_v1 }
 0x22c   :  { %v2014_v15 = vpop.permute.xlu0 %2013  ;;  %v1650_v44 = vpack.c.bf16 %v1313_v56, %v1309_v42 }
 0x22d   :  { %v2016_v61 = vunpack.i.h.bf16 %v2014_v15  ;;  %v2015_v55 = vunpack.i.l.bf16 %v2014_v15  ;;  %v1337_v13 = vsel %vm765_vm10, %v2030_v54, %v2031_v16 }
 0x22e   :  { %v2034_v6 = vpop.permute.xlu1 %2033  ;;  %1649 = vmatpush1.bf16.msra.mxu1 %v1648_v27 }
 0x22f   :  { %v1308_v58 = vsel %vm765_vm10, %v2015_v55, %v1960_v36  ;;  %v1312_v25 = vsel %vm765_vm10, %v2016_v61, %v2010_v51  ;;  %1651 = vmatprep.subr.bf16.mxu1 %v1650_v44  ;;  %v1333_v51 = vsel %vm765_vm10, %v1975_v5, %v1976_v8  ;;  %v2036_v32 = vunpack.i.h.bf16 %v2034_v6 }
 0x230   :  { %v1652_v43 = vpack.c.bf16 %v1312_v25, %v1308_v58  ;;  %v3379_v26 = vpop.permute.xlu0 %2023  ;;  %v2035_v42 = vunpack.i.l.bf16 %v2034_v6  ;;  %v1662_v56 = vpack.c.bf16 %v1337_v13, %v1333_v51 }
 0x231   :  { %v2026_v30 = vunpack.i.h.bf16 %v3379_v26  ;;  %v2025_v24 = vunpack.i.l.bf16 %v3379_v26 }
 0x232   :  { %v3389_v59 = vpop.permute.xlu1 %2043  ;;  %1653 = vmatpush1.bf16.msra.mxu1 %v1652_v43  ;;  %v1294_v61 = vsel %vm765_vm10, %v1951_v3, %v2035_v42  ;;  %v1295_v1 = vsel %vm765_vm10, %v2035_v42, %v2036_v32 }
 0x233   :  { %1655 = vmatprep.subr.bf16.mxu1 %v1654_v52  ;;  %v1329_v22 = vsel %vm765_vm10, %v2025_v24, %v2026_v30  ;;  %v1328_v49 = vsel %vm765_vm10, %v1986_v41, %v2025_v24  ;;  %v2046_v38 = vunpack.i.h.bf16 %v3389_v59  ;;  %v2045_v41 = vunpack.i.l.bf16 %v3389_v59 }
 0x234   :  { %v2039_v36 = vpop.permute.xlu0 %2038  ;;  %v1658_v4 = vpack.c.bf16 %v1329_v22, %v1325_v48  ;;  %v1660_v9 = vpack.c.bf16 %v1328_v49, %v1324_v20 }
 0x235   :  { %v2041_v57 = vunpack.i.h.bf16 %v2039_v36  ;;  %v2040_v31 = vunpack.i.l.bf16 %v2039_v36  ;;  %v1311_v32 = vsel %vm765_vm10, %v2045_v41, %v2046_v38  ;;  %v1310_v50 = vsel %vm765_vm10, %v1961_v63, %v2045_v41 }
 0x236   :  { %v3403_v46 = vpop.permute.xlu1 %2053  ;;  %1657 = vmatpush1.bf16.msra.mxu1 %v1656_v0 }
 0x237   :  { %1659 = vmatprep.subr.bf16.mxu1 %v1658_v4  ;;  %v1303_v36 = vsel %vm765_vm10, %v2040_v31, %v2041_v57 }
 0x238   :  { %v3409_v62 = vpop.permute.xlu0 %2048 }
 0x239   :  { %v2051_v42 = vunpack.i.h.bf16 %v3409_v62  ;;  %v2050_v17 = vunpack.i.l.bf16 %v3409_v62 }
 0x23a   :  { %v2064_v33 = vpop.permute.xlu1 %2063  ;;  %1661 = vmatpush1.bf16.msra.mxu1 %v1660_v9 }
 0x23b   :  { %v2066_v27 = vunpack.i.h.bf16 %v2064_v33  ;;  %v2065_v15 = vunpack.i.l.bf16 %v2064_v33  ;;  %1663 = vmatprep.subr.bf16.mxu1 %v1662_v56  ;;  %v1319_v63 = vsel %vm765_vm10, %v2050_v17, %v2051_v42 }
 0x23c   :  { %v3414_v44 = vpop.permute.xlu0 %2058 }
 0x23d   :  { %v1298_v55 = vsel %vm765_vm10, %v1991_v12, %v2065_v15  ;;  %v1299_v6 = vsel %vm765_vm10, %v2065_v15, %v2066_v27 }
 0x23e   :  { %v1680_v37 = vpack.c.bf16 %v1298_v55, %v1294_v61  ;;  %v2069_v11 = vpop.permute.xlu1 %2068  ;;  %v1678_v10 = vpack.c.bf16 %v1299_v6, %v1295_v1  ;;  %v2055_v6 = vunpack.i.l.bf16 %v3403_v46 }
 0x23f   :  { %v2071_v58 = vunpack.i.h.bf16 %v2069_v11  ;;  %v2070_v25 = vunpack.i.l.bf16 %v2069_v11 }
 0x240   :  { %1679 = vmatprep.subr.bf16.mxu0 %v1678_v10  ;;  %v3424_v43 = vpop.permute.xlu0 %2073 }
 0x241   :  { %v1332_v28 = vsel %vm765_vm10, %v2070_v25, %v1975_v5  ;;  %v1336_v3 = vsel %vm765_vm10, %v2071_v58, %v2030_v54  ;;  %1681 = vmatpush1.bf16.msra.mxu0 %v1680_v37  ;;  %v1302_v5 = vsel %vm765_vm10, %v1956_v47, %v2040_v31  ;;  %v2076_v54 = vunpack.i.h.bf16 %v3424_v43 }
 0x242   :  { %v1664_v12 = vpack.c.bf16 %v1336_v3, %v1332_v28  ;;  %v2084_v2 = vpop.permute.xlu1 %2083  ;;  %v2075_v4 = vunpack.i.l.bf16 %v3424_v43  ;;  %v1318_v58 = vsel %vm765_vm10, %v1966_v7, %v2050_v17 }
 0x243   :  { %v2086_v24 = vunpack.i.h.bf16 %v2084_v2  ;;  %v2085_v52 = vunpack.i.l.bf16 %v2084_v2  ;;  %v2061_v2 = vunpack.i.h.bf16 %v3414_v44 }
 0x244   :  { %1665 = vmatpush1.bf16.msra.mxu1 %v1664_v12  ;;  %v2079_v48 = vpop.permute.xlu0 %2078  ;;  %v1341_v61 = vsel %vm765_vm10, %v2075_v4, %v2076_v54 }
 0x245   :  { %v2081_v19 = vunpack.i.h.bf16 %v2079_v48  ;;  %v2080_v22 = vunpack.i.l.bf16 %v2079_v48  ;;  %v1315_v13 = vsel %vm765_vm10, %v2085_v52, %v2086_v24  ;;  %v2060_v24 = vunpack.i.l.bf16 %v3414_v44 }
 0x246   :  { %v3434_v0 = vpop.permute.xlu1 %2088  ;;  %v1686_v33 = vpack.c.bf16 %v1315_v13, %v1311_v32 }
 0x247   :  { %v1306_v49 = vsel %vm765_vm10, %v2001_v35, %v2080_v22  ;;  %v1307_v59 = vsel %vm765_vm10, %v2080_v22, %v2081_v19  ;;  %v1314_v35 = vsel %vm765_vm10, %v2011_v53, %v2085_v52  ;;  %v2056_v53 = vunpack.i.h.bf16 %v3403_v46 }
 0x248   :  { %v1684_v20 = vpack.c.bf16 %v1306_v49, %v1302_v5  ;;  %v3443_v23 = vpop.permute.xlu0 %2093  ;;  %v1682_v47 = vpack.c.bf16 %v1307_v59, %v1303_v36  ;;  %v1688_v37 = vpack.c.bf16 %v1314_v35, %v1310_v50  ;;  %v2091_v19 = vunpack.i.h.bf16 %v3434_v0 }
 0x249   :  { %v2096_v9 = vunpack.i.h.bf16 %v3443_v23  ;;  %v2095_v51 = vunpack.i.l.bf16 %v3443_v23  ;;  %v1327_v40 = vsel %vm765_vm10, %v2055_v6, %v2056_v53  ;;  %v2090_v60 = vunpack.i.l.bf16 %v3434_v0 }
 0x24a   :  { %v2109_v56 = vpop.permute.xlu1 %2108  ;;  %1683 = vmatprep.subr.bf16.mxu0 %v1682_v47 }
 0x24b   :  { %v2111_v27 = vunpack.i.h.bf16 %v2109_v56  ;;  %v2110_v15 = vunpack.i.l.bf16 %v2109_v56  ;;  %1685 = vmatpush1.bf16.msra.mxu0 %v1684_v20  ;;  %v1345_v55 = vsel %vm765_vm10, %v2095_v51, %v2096_v9  ;;  %v1335_v20 = vsel %vm765_vm10, %v2060_v24, %v2061_v2 }
 0x24c   :  { %v2099_v62 = vpop.permute.xlu0 %2098  ;;  %1687 = vmatprep.subr.bf16.mxu0 %v1686_v33  ;;  %v1666_v1 = vpack.c.bf16 %v1345_v55, %v1341_v61  ;;  %v1343_v34 = vsel %vm765_vm10, %v2090_v60, %v2091_v19 }
 0x24d   :  { %v2101_v11 = vunpack.i.h.bf16 %v2099_v62  ;;  %v2100_v10 = vunpack.i.l.bf16 %v2099_v62  ;;  %v1331_v46 = vsel %vm765_vm10, %v2110_v15, %v2111_v27  ;;  %v1330_v45 = vsel %vm765_vm10, %v2026_v30, %v2110_v15 }
 0x24e   :  { %v3467_v25 = vpop.permute.xlu1 %2113  ;;  %1667 = vmatprep.subr.bf16.mxu1 %v1666_v1  ;;  %v1694_v48 = vpack.c.bf16 %v1331_v46, %v1327_v40 }
 0x24f   :  { %v1322_v18 = vsel %vm765_vm10, %v2021_v39, %v2100_v10  ;;  %1689 = vmatpush1.bf16.msra.mxu0 %v1688_v37  ;;  %v1323_v28 = vsel %vm765_vm10, %v2100_v10, %v2101_v11  ;;  %v1326_v39 = vsel %vm765_vm10, %v1971_v21, %v2055_v6  ;;  %v2116_v44 = vunpack.i.h.bf16 %v3467_v25 }
 0x250   :  { %v1692_v3 = vpack.c.bf16 %v1322_v18, %v1318_v58  ;;  %v2104_v57 = vpop.permute.xlu0 %2103  ;;  %v1690_v31 = vpack.c.bf16 %v1323_v28, %v1319_v63  ;;  %v1696_v22 = vpack.c.bf16 %v1330_v45, %v1326_v39  ;;  %v2115_v36 = vunpack.i.l.bf16 %v3467_v25 }
 0x251   :  { %v2106_v7 = vunpack.i.h.bf16 %v2104_v57  ;;  %v2105_v12 = vunpack.i.l.bf16 %v2104_v57 }
 0x252   :  { %v2129_v52 = vpop.permute.xlu1 %2128  ;;  %1691 = vmatprep.subr.bf16.mxu0 %v1690_v31  ;;  %v1349_v56 = vsel %vm765_vm10, %v2115_v36, %v2116_v44 }
 0x253   :  { %v1340_v38 = vsel %vm765_vm10, %v2105_v12, %v2075_v4  ;;  %v1344_v26 = vsel %vm765_vm10, %v2106_v7, %v2095_v51  ;;  %v2131_v30 = vunpack.i.h.bf16 %v2129_v52  ;;  %v2130_v41 = vunpack.i.l.bf16 %v2129_v52  ;;  %1693 = vmatpush1.bf16.msra.mxu0 %v1692_v3 }
 0x254   :  { %v1668_v21 = vpack.c.bf16 %v1344_v26, %v1340_v38  ;;  %v2119_v5 = vpop.permute.xlu0 %2118  ;;  %1695 = vmatprep.subr.bf16.mxu0 %v1694_v48  ;;  %v1334_v4 = vsel %vm765_vm10, %v1976_v8, %v2060_v24 }
 0x255   :  { %v2121_v49 = vunpack.i.h.bf16 %v2119_v5  ;;  %v2120_v59 = vunpack.i.l.bf16 %v2119_v5  ;;  %v1347_v0 = vsel %vm765_vm10, %v2130_v41, %v2131_v30  ;;  %v1346_v8 = vsel %vm765_vm10, %v2096_v9, %v2130_v41 }
 0x256   :  { %v2134_v13 = vpop.permute.xlu1 %2133  ;;  %1669 = vmatpush1.bf16.msra.mxu1 %v1668_v21  ;;  %v1702_v61 = vpack.c.bf16 %v1347_v0, %v1343_v34 }
 0x257   :  { %v1338_v47 = vsel %vm765_vm10, %v2031_v16, %v2120_v59  ;;  %v2136_v51 = vunpack.i.h.bf16 %v2134_v13  ;;  %v2135_v32 = vunpack.i.l.bf16 %v2134_v13  ;;  %1697 = vmatpush1.bf16.msra.mxu0 %v1696_v22  ;;  %v1339_v42 = vsel %vm765_vm10, %v2120_v59, %v2121_v49 }
 0x258   :  { %v1700_v17 = vpack.c.bf16 %v1338_v47, %v1334_v4  ;;  %v2124_v35 = vpop.permute.xlu0 %2123  ;;  %v1698_v14 = vpack.c.bf16 %v1339_v42, %v1335_v20  ;;  %v1342_v16 = vsel %vm765_vm10, %v2076_v54, %v2090_v60 }
 0x259   :  { %v1353_v33 = vsel %vm765_vm10, %v2135_v32, %v2136_v51  ;;  %v2126_v55 = vunpack.i.h.bf16 %v2124_v35  ;;  %v2125_v50 = vunpack.i.l.bf16 %v2124_v35  ;;  %v1704_v9 = vpack.c.bf16 %v1346_v8, %v1342_v16 }
 0x25a   :  { %v2144_v27 = vpop.permute.xlu1 %2143  ;;  %v1670_v15 = vpack.c.bf16 %v1353_v33, %v1349_v56  ;;  %1699 = vmatprep.subr.bf16.mxu0 %v1698_v14 }
 0x25b   :  { %v2146_v53 = vunpack.i.h.bf16 %v2144_v27  ;;  %v2145_v23 = vunpack.i.l.bf16 %v2144_v27  ;;  %1701 = vmatpush1.bf16.msra.mxu0 %v1700_v17  ;;  %v1350_v11 = vsel %vm765_vm10, %v2116_v44, %v2125_v50  ;;  %v1351_v58 = vsel %vm765_vm10, %v2125_v50, %v2126_v55 }
 0x25c   :  { %1671 = vmatprep.subr.bf16.mxu1 %v1670_v15  ;;  %v2139_v62 = vpop.permute.xlu0 %2138  ;;  %1703 = vmatprep.subr.bf16.mxu0 %v1702_v61 }
 0x25d   :  { %v1348_v1 = vsel %vm765_vm10, %v2145_v23, %v2115_v36  ;;  %v1352_v6 = vsel %vm765_vm10, %v2146_v53, %v2135_v32  ;;  %v2141_v43 = vunpack.i.h.bf16 %v2139_v62  ;;  %v2140_v37 = vunpack.i.l.bf16 %v2139_v62 }
 0x25e   :  { %v1672_v54 = vpack.c.bf16 %v1352_v6, %v1348_v1 }
 0x25f   :  { %v1354_v10 = vsel %vm765_vm10, %v2136_v51, %v2140_v37  ;;  %1705 = vmatpush1.bf16.msra.mxu0 %v1704_v9  ;;  %v1355_v25 = vsel %vm765_vm10, %v2140_v37, %v2141_v43 }
 0x260   :  { %v1708_v18 = vpack.c.bf16 %v1354_v10, %v1350_v11  ;;  %1673 = vmatpush1.bf16.msra.mxu1 %v1672_v54  ;;  %v1706_v63 = vpack.c.bf16 %v1355_v25, %v1351_v58 }
 0x262   :  { %1707 = vmatprep.subr.bf16.mxu0 %v1706_v63 }
 0x263   :  { %1495 = vmatmul.mubr.f32.vlgmr.msra.gmra.mrb[4].mxu1 %v3289_v29  ;;  %1709 = vmatpush1.bf16.msra.mxu0 %v1708_v18 }
 0x266   :  { %1566 = vmatmul.mubr.f32.vlgmr.msra.gmra.mrb[8].mxu0 %v3289_v29 }
 0x26d   :  { %v1090_v28 = vpop.permute.xlu0 %1089 }
 0x336   :  { %v1496_v46 = vpop.f32.mrb[4].mxu1 }
 0x337   :  { %v1497_v3 = vadd.f32 %v1496_v46, %v1090_v28  ;;  %v1498_v57 = vpop.f32.mrb[5].mxu1 }
 0x338   :  { %v1499_v31 = vadd.f32 %v1498_v57, %v1090_v28 }
 0x339   :  { %v1567_v45 = vpop.f32.mrb[8].mxu0 }
 0x33a   :  { %v1576_v7 = vcombine.low %v1497_v3, %v1499_v31  ;;  %v1568_v12 = vadd.f32 %v1567_v45, %v1090_v28  ;;  %v1569_v40 = vpop.f32.mrb[9].mxu0 }
 0x33b   :  { %v1570_v39 = vadd.f32 %v1569_v40, %v1090_v28 }
 0x33c   :  { %1580 = vst [vmem:[%s3528_s6] sm:$0x77] %v1576_v7 }
 0x33d   :  { %v1577_v2 = vcombine.low %v1568_v12, %v1570_v39 }
 0x33f   :  { %1581 = vst [vmem:[%s3528_s6 + $0x8] sm:$0x77] %v1577_v2 }

</bundles_post_ra>
